<compile_context>
chip_gen: v5e
topology: v5e:2x2
jax: 0.10.0
libtpu: 0.0.40
codegen_flags: <defaults>
</compile_context>

<pallas_src>
import functools

import jax
import jax.numpy as jnp
from jax.experimental import pallas as pl
from jax.experimental.pallas import tpu as pltpu

SIGMA_MIN = 1e-4
K = 3  # conv1d kernel size ("same" padding)


# ----------------------------- fused Pallas kernel -----------------------------

def _cfm_fused_kernel(t_ref, x1_ref, z_ref, mu_ref, mask_ref, cond1_ref,
                      w1_ref, w2_ref, b2_ref,
                      y_ref, sq_ref,
                      taps1_s, taps2_s,
                      *, sigma_min, B, C, T, H):
    # t_ref:    (B, 1, 1) f32                 per-batch flow time
    # x1/z/mu:  (B, C, T) f32                 target / noise / encoder output
    # mask_ref: (B, 1, T) f32
    # cond1_ref:(B, H, 1) f32                 temb + spk projection + conv1 bias
    # w1_ref:   (H, K*2C) bf16                conv1 weights, taps stacked on contraction dim
    # w2_ref:   (C, K*H)  bf16                conv2 weights
    # b2_ref:   (C, 1)    f32
    # y_ref:    (B, C, T)                     conditional flow (output)
    # sq_ref:   (1, 1)    f32                 sum((denoised - u)^2) over the whole batch
    # taps1_s:  VMEM (K*2C, B*T) bf16 scratch  conv1 tap stack (batch folded on lanes)
    # taps2_s:  VMEM (K*H,  B*T) bf16 scratch  conv2 tap stack
    f32 = jnp.float32

    # Hoisted "same"-padding edge masks, shared by every tap stack (both layers, all b).
    col = jax.lax.broadcasted_iota(jnp.int32, (1, T), 1)
    left_keep = (col > 0).astype(f32)        # zero column 0 of the x[:, t-1] tap
    right_keep = (col < T - 1).astype(f32)   # zero column T-1 of the x[:, t+1] tap

    def write_taps(scratch, x, ch_off, tap_stride, lane0):
        # x: (Cin, T) f32.  Write the K=3 shifted views (bf16) directly into `scratch`
        # at rows [tap*tap_stride + ch_off, +Cin) and lanes [lane0, lane0+T).
        cin = x.shape[0]
        left = pltpu.roll(x, shift=1, axis=1) * left_keep        # x[:, t-1]
        right = pltpu.roll(x, shift=T - 1, axis=1) * right_keep  # x[:, t+1]
        for tap, v in enumerate((left, x, right)):
            r0 = tap * tap_stride + ch_off
            scratch[r0:r0 + cin, lane0:lane0 + T] = v.astype(jnp.bfloat16)

    # ---- per-batch conditional flow + target velocity + conv1 tap stack ----
    u_list = []
    for b in range(B):
        t = t_ref[b]                                   # (1, 1) f32
        x1 = x1_ref[b]                                 # (C, T) f32
        z = z_ref[b]
        mu = mu_ref[b]
        y = (1.0 - (1.0 - sigma_min) * t) * z + t * x1
        u_list.append(x1 - (1.0 - sigma_min) * z)
        y_ref[b] = y.astype(y_ref.dtype)
        # conv1 input channels are [y ; mu] -> two channel groups per tap block
        write_taps(taps1_s, y, 0, 2 * C, b * T)
        write_taps(taps1_s, mu, C, 2 * C, b * T)

    mask_lane = jnp.concatenate([mask_ref[b] for b in range(B)], axis=1)       # (1, B*T)
    cond_lane = jnp.concatenate(
        [jnp.broadcast_to(cond1_ref[b], (H, T)) for b in range(B)], axis=1)    # (H, B*T)

    # ---- conv1 (single MXU dot, N = B*T) + conditioning bias, SiLU, mask ----
    h = jnp.dot(w1_ref[...], taps1_s[...], preferred_element_type=f32)         # (H, B*T)
    h = h + cond_lane
    h = h * jax.nn.sigmoid(h)                                                  # SiLU
    h = h * mask_lane

    # ---- conv2 tap stack + second MXU dot (+bias, mask) -> denoised velocity ----
    for b in range(B):
        write_taps(taps2_s, h[:, b * T:(b + 1) * T], 0, H, b * T)
    d = jnp.dot(w2_ref[...], taps2_s[...], preferred_element_type=f32)         # (C, B*T)
    d = (d + b2_ref[...]) * mask_lane

    # ---- fused MSE numerator: sum((denoised - u)^2) over all batches ----
    acc = jnp.zeros((1, 1), f32)
    for b in range(B):
        diff = d[:, b * T:(b + 1) * T] - u_list[b]
        acc = acc + jnp.sum(diff * diff, keepdims=True)
    sq_ref[...] = acc


def cfm_fused_pallas(t, x1, z, mu, mask, cond1, w1_flat, w2_flat, b2_col, sigma_min):
    # t: (B,1,1) f32; x1, z, mu: (B,C,T); mask: (B,1,T); cond1: (B,H,1)
    # w1_flat: (H, K*2C) bf16; w2_flat: (C, K*H) bf16; b2_col: (C, 1) f32
    B, C, T = x1.shape
    H = w1_flat.shape[0]
    assert w1_flat.shape == (H, K * 2 * C) and w2_flat.shape == (C, K * H)

    kernel = functools.partial(_cfm_fused_kernel, sigma_min=sigma_min,
                               B=B, C=C, T=T, H=H)
    # Single invocation (no grid): whole arrays land in VMEM; batch is folded onto the
    # lane/N axis inside the kernel so each conv layer is one MXU dot with N = B*T.
    y, sq = pl.pallas_call(
        kernel,
        out_shape=(jax.ShapeDtypeStruct((B, C, T), x1.dtype),
                   jax.ShapeDtypeStruct((1, 1), jnp.float32)),
        scratch_shapes=[
            pltpu.VMEM((K * 2 * C, B * T), jnp.bfloat16),   # conv1 tap stack
            pltpu.VMEM((K * H, B * T), jnp.bfloat16),       # conv2 tap stack
        ],
    )(t, x1, z, mu, mask, cond1, w1_flat, w2_flat, b2_col)
    return y, sq


# ----------------------------- glue (tiny plain-JAX pieces) -----------------------------

def sinusoidal_emb(t, dim):
    # t: (B,) in [0, 1]
    half = dim // 2
    freqs = jnp.exp(-jnp.log(10000.0) * jnp.arange(half, dtype=jnp.float32) / (half - 1))
    args = (t[:, None] * 1000.0) * freqs[None, :]
    return jnp.concatenate([jnp.sin(args), jnp.cos(args)], axis=-1)


def cfm_forward(params, key, x1, mask, mu, spks, sigma_min=SIGMA_MIN):
    """CFM.forward == compute_loss.  x1, mu: (B, C, T); mask: (B, 1, T); spks: (B, S)."""
    B, C, T = x1.shape
    k_t, k_z = jax.random.split(key)
    t = jax.random.uniform(k_t, (B,), dtype=x1.dtype)      # ~ torch.rand([b, 1, 1])
    z = jax.random.normal(k_z, x1.shape, dtype=x1.dtype)   # ~ torch.randn_like(x1)

    # time-embedding MLP + speaker projection: tiny (B, H) math, folded into a single
    # per-batch conv1 conditioning bias (spks is constant over T).
    temb = sinusoidal_emb(t, params["t_dim"])
    temb = jax.nn.silu(temb @ params["wt1"] + params["bt1"])
    temb = temb @ params["wt2"] + params["bt2"]                        # (B, H)
    spk_bias = spks @ params["w1_spk"]                                 # (B, H)
    H = params["b1"].shape[0]
    cond1 = (temb + spk_bias + params["b1"]).reshape(B, H, 1).astype(jnp.float32)

    y, sq = cfm_fused_pallas(t.reshape(B, 1, 1).astype(jnp.float32),
                             x1, z, mu, mask, cond1,
                             params["w1_flat"], params["w2_flat"], params["b2_col"],
                             sigma_min)

    # loss = sum((denoised - u)^2) / (sum(mask) * n_feats)   (mask_l is None)
    loss = sq[0, 0] / (jnp.sum(mask) * C)
    return loss, y


def init_params(key, n_feats, spk_dim, hidden, t_dim):
    keys = jax.random.split(key, 5)
    cin1 = 2 * n_feats     # [y; mu] channels
    s = 0.05
    # conv weights created as (K, Cout, Cin) then pre-flattened/pre-cast ONCE here
    # (not inside the jit'd step) to (Cout, K*Cin) bf16 MXU operands.
    w1 = s * jax.random.normal(keys[2], (K, hidden, cin1), jnp.float32)
    w2 = s * jax.random.normal(keys[4], (K, n_feats, hidden), jnp.float32)
    return {
        "t_dim": t_dim,
        "wt1": s * jax.random.normal(keys[0], (t_dim, hidden), jnp.float32),
        "bt1": jnp.zeros((hidden,), jnp.float32),
        "wt2": s * jax.random.normal(keys[1], (hidden, hidden), jnp.float32),
        "bt2": jnp.zeros((hidden,), jnp.float32),
        "w1_spk": s * jax.random.normal(keys[3], (spk_dim, hidden), jnp.float32),
        "b1": jnp.zeros((hidden,), jnp.float32),
        "w1_flat": jnp.transpose(w1, (1, 0, 2)).reshape(hidden, K * cin1).astype(jnp.bfloat16),
        "w2_flat": jnp.transpose(w2, (1, 0, 2)).reshape(n_feats, K * hidden).astype(jnp.bfloat16),
        "b2_col": jnp.zeros((n_feats, 1), jnp.float32),
    }


if __name__ == "__main__":
    # small but lane-dense shapes: T (mel frames) is the 128-lane axis, batch folds onto it
    B, C, T = 2, 16, 256      # batch, n_feats (=in=out channels), mel_timesteps
    S, H, TDIM = 32, 32, 32   # spk_embed_dim, decoder hidden, time-emb dim

    key = jax.random.PRNGKey(0)
    kp, kx, km, ks, kf = jax.random.split(key, 5)

    params = init_params(kp, C, S, H, TDIM)
    x1 = jax.random.normal(kx, (B, C, T), jnp.float32)    # target mel
    mu = jax.random.normal(km, (B, C, T), jnp.float32)    # encoder output
    spks = jax.random.normal(ks, (B, S), jnp.float32)     # speaker embedding
    mask = jnp.ones((B, 1, T), jnp.float32)                # output mask

    fwd = jax.jit(functools.partial(cfm_forward, params))
    loss, y = fwd(kf, x1, mask, mu, spks)
    jax.block_until_ready((loss, y))
    assert y.shape == (B, C, T) and loss.shape == ()
    assert bool(jnp.isfinite(loss))
    print("KERNEL_OK")
</pallas_src>

<mosaic_0001>
module attributes {stable_mosaic.version = 11 : i64} {
  func.func @_cfm_fused_kernel(%arg0: memref<2x1x1xf32, #tpu.memory_space<vmem>>, %arg1: memref<2x16x256xf32, #tpu.memory_space<vmem>>, %arg2: memref<2x16x256xf32, #tpu.memory_space<vmem>>, %arg3: memref<2x16x256xf32, #tpu.memory_space<vmem>>, %arg4: memref<2x1x256xf32, #tpu.memory_space<vmem>>, %arg5: memref<2x32x1xf32, #tpu.memory_space<vmem>>, %arg6: memref<32x96xbf16, #tpu.memory_space<vmem>>, %arg7: memref<16x96xbf16, #tpu.memory_space<vmem>>, %arg8: memref<16x1xf32, #tpu.memory_space<vmem>>, %arg9: memref<2x16x256xf32, #tpu.memory_space<vmem>>, %arg10: memref<1x1xf32, #tpu.memory_space<vmem>>, %arg11: memref<96x512xbf16, #tpu.memory_space<vmem>>, %arg12: memref<96x512xbf16, #tpu.memory_space<vmem>>) attributes {dimension_semantics = [], scalar_prefetch = 0 : i64, scratch_operands = 2 : i64, tpu.core_type = #tpu.core_type<tc>} {
    %0 = tpu.iota {dimensions = array<i32: 1>} : vector<1x256xi32>
    %c0_i32 = arith.constant 0 : i32
    %1 = vector.broadcast %c0_i32 : i32 to vector<1x256xi32>
    %2 = arith.cmpi sgt, %0, %1 : vector<1x256xi32>
    %3 = arith.extui %2 : vector<1x256xi1> to vector<1x256xi32>
    %4 = arith.sitofp %3 : vector<1x256xi32> to vector<1x256xf32>
    %c255_i32 = arith.constant 255 : i32
    %5 = vector.broadcast %c255_i32 : i32 to vector<1x256xi32>
    %6 = arith.cmpi slt, %0, %5 : vector<1x256xi32>
    %7 = arith.extui %6 : vector<1x256xi1> to vector<1x256xi32>
    %8 = arith.sitofp %7 : vector<1x256xi32> to vector<1x256xf32>
    %c0 = arith.constant 0 : index
    %c0_0 = arith.constant 0 : index
    %c0_1 = arith.constant 0 : index
    %9 = vector.load %arg0[%c0, %c0_0, %c0_1] : memref<2x1x1xf32, #tpu.memory_space<vmem>>, vector<1x1x1xf32>
    %10 = vector.shape_cast %9 : vector<1x1x1xf32> to vector<1x1xf32>
    %c0_2 = arith.constant 0 : index
    %c0_3 = arith.constant 0 : index
    %c0_4 = arith.constant 0 : index
    %11 = vector.load %arg1[%c0_2, %c0_3, %c0_4] : memref<2x16x256xf32, #tpu.memory_space<vmem>>, vector<1x16x256xf32>
    %12 = vector.shape_cast %11 : vector<1x16x256xf32> to vector<16x256xf32>
    %c0_5 = arith.constant 0 : index
    %c0_6 = arith.constant 0 : index
    %c0_7 = arith.constant 0 : index
    %13 = vector.load %arg2[%c0_5, %c0_6, %c0_7] : memref<2x16x256xf32, #tpu.memory_space<vmem>>, vector<1x16x256xf32>
    %14 = vector.shape_cast %13 : vector<1x16x256xf32> to vector<16x256xf32>
    %c0_8 = arith.constant 0 : index
    %c0_9 = arith.constant 0 : index
    %c0_10 = arith.constant 0 : index
    %15 = vector.load %arg3[%c0_8, %c0_9, %c0_10] : memref<2x16x256xf32, #tpu.memory_space<vmem>>, vector<1x16x256xf32>
    %16 = vector.shape_cast %15 : vector<1x16x256xf32> to vector<16x256xf32>
    %cst = arith.constant 0.999899983 : f32
    %17 = vector.broadcast %cst : f32 to vector<1x1xf32>
    %18 = arith.mulf %17, %10 : vector<1x1xf32>
    %cst_11 = arith.constant 1.000000e+00 : f32
    %19 = vector.broadcast %cst_11 : f32 to vector<1x1xf32>
    %20 = arith.subf %19, %18 : vector<1x1xf32>
    %21 = vector.broadcast %20 : vector<1x1xf32> to vector<16x256xf32>
    %22 = arith.mulf %21, %14 : vector<16x256xf32>
    %23 = vector.broadcast %10 : vector<1x1xf32> to vector<16x256xf32>
    %24 = arith.mulf %23, %12 : vector<16x256xf32>
    %25 = arith.addf %22, %24 : vector<16x256xf32>
    %cst_12 = arith.constant 0.999899983 : f32
    %26 = vector.broadcast %cst_12 : f32 to vector<16x256xf32>
    %27 = arith.mulf %26, %14 : vector<16x256xf32>
    %28 = arith.subf %12, %27 : vector<16x256xf32>
    %c0_13 = arith.constant 0 : index
    %c0_14 = arith.constant 0 : index
    %c0_15 = arith.constant 0 : index
    %29 = vector.load %arg9[%c0_13, %c0_14, %c0_15] : memref<2x16x256xf32, #tpu.memory_space<vmem>>, vector<1x16x256xf32>
    %30 = vector.shape_cast %29 : vector<1x16x256xf32> to vector<16x256xf32>
    %31 = vector.shape_cast %25 : vector<16x256xf32> to vector<1x16x256xf32>
    tpu.vector_store %arg9[%c0_13, %c0_14, %c0_15], %31 {strides = array<i32>} : memref<2x16x256xf32, #tpu.memory_space<vmem>>, vector<1x16x256xf32>,
    %c1_i32 = arith.constant 1 : i32
    %32 = tpu.dynamic_rotate %25 by %c1_i32 dim 1 : vector<16x256xf32>, i32 -> vector<16x256xf32>
    %33 = vector.broadcast %4 : vector<1x256xf32> to vector<16x256xf32>
    %34 = arith.mulf %32, %33 : vector<16x256xf32>
    %c255_i32_16 = arith.constant 255 : i32
    %35 = tpu.dynamic_rotate %25 by %c255_i32_16 dim 1 : vector<16x256xf32>, i32 -> vector<16x256xf32>
    %36 = vector.broadcast %8 : vector<1x256xf32> to vector<16x256xf32>
    %37 = arith.mulf %35, %36 : vector<16x256xf32>
    %38 = arith.truncf %34 : vector<16x256xf32> to vector<16x256xbf16>
    %c0_17 = arith.constant 0 : index
    %c0_18 = arith.constant 0 : index
    %39 = vector.load %arg11[%c0_17, %c0_18] : memref<96x512xbf16, #tpu.memory_space<vmem>>, vector<16x256xbf16>
    tpu.vector_store %arg11[%c0_17, %c0_18], %38 {strides = array<i32>} : memref<96x512xbf16, #tpu.memory_space<vmem>>, vector<16x256xbf16>,
    %40 = arith.truncf %25 : vector<16x256xf32> to vector<16x256xbf16>
    %c32 = arith.constant 32 : index
    %c0_19 = arith.constant 0 : index
    %41 = vector.load %arg11[%c32, %c0_19] : memref<96x512xbf16, #tpu.memory_space<vmem>>, vector<16x256xbf16>
    tpu.vector_store %arg11[%c32, %c0_19], %40 {strides = array<i32>} : memref<96x512xbf16, #tpu.memory_space<vmem>>, vector<16x256xbf16>,
    %42 = arith.truncf %37 : vector<16x256xf32> to vector<16x256xbf16>
    %c64 = arith.constant 64 : index
    %c0_20 = arith.constant 0 : index
    %43 = vector.load %arg11[%c64, %c0_20] : memref<96x512xbf16, #tpu.memory_space<vmem>>, vector<16x256xbf16>
    tpu.vector_store %arg11[%c64, %c0_20], %42 {strides = array<i32>} : memref<96x512xbf16, #tpu.memory_space<vmem>>, vector<16x256xbf16>,
    %c1_i32_21 = arith.constant 1 : i32
    %44 = tpu.dynamic_rotate %16 by %c1_i32_21 dim 1 : vector<16x256xf32>, i32 -> vector<16x256xf32>
    %45 = vector.broadcast %4 : vector<1x256xf32> to vector<16x256xf32>
    %46 = arith.mulf %44, %45 : vector<16x256xf32>
    %c255_i32_22 = arith.constant 255 : i32
    %47 = tpu.dynamic_rotate %16 by %c255_i32_22 dim 1 : vector<16x256xf32>, i32 -> vector<16x256xf32>
    %48 = vector.broadcast %8 : vector<1x256xf32> to vector<16x256xf32>
    %49 = arith.mulf %47, %48 : vector<16x256xf32>
    %50 = arith.truncf %46 : vector<16x256xf32> to vector<16x256xbf16>
    %c16 = arith.constant 16 : index
    %c0_23 = arith.constant 0 : index
    %51 = vector.load %arg11[%c16, %c0_23] : memref<96x512xbf16, #tpu.memory_space<vmem>>, vector<16x256xbf16>
    tpu.vector_store %arg11[%c16, %c0_23], %50 {strides = array<i32>} : memref<96x512xbf16, #tpu.memory_space<vmem>>, vector<16x256xbf16>,
    %52 = arith.truncf %16 : vector<16x256xf32> to vector<16x256xbf16>
    %c48 = arith.constant 48 : index
    %c0_24 = arith.constant 0 : index
    %53 = vector.load %arg11[%c48, %c0_24] : memref<96x512xbf16, #tpu.memory_space<vmem>>, vector<16x256xbf16>
    tpu.vector_store %arg11[%c48, %c0_24], %52 {strides = array<i32>} : memref<96x512xbf16, #tpu.memory_space<vmem>>, vector<16x256xbf16>,
    %54 = arith.truncf %49 : vector<16x256xf32> to vector<16x256xbf16>
    %c80 = arith.constant 80 : index
    %c0_25 = arith.constant 0 : index
    %55 = vector.load %arg11[%c80, %c0_25] : memref<96x512xbf16, #tpu.memory_space<vmem>>, vector<16x256xbf16>
    tpu.vector_store %arg11[%c80, %c0_25], %54 {strides = array<i32>} : memref<96x512xbf16, #tpu.memory_space<vmem>>, vector<16x256xbf16>,
    %c1 = arith.constant 1 : index
    %c0_26 = arith.constant 0 : index
    %c0_27 = arith.constant 0 : index
    %56 = vector.load %arg0[%c1, %c0_26, %c0_27] : memref<2x1x1xf32, #tpu.memory_space<vmem>>, vector<1x1x1xf32>
    %57 = vector.shape_cast %56 : vector<1x1x1xf32> to vector<1x1xf32>
    %c1_28 = arith.constant 1 : index
    %c0_29 = arith.constant 0 : index
    %c0_30 = arith.constant 0 : index
    %58 = vector.load %arg1[%c1_28, %c0_29, %c0_30] : memref<2x16x256xf32, #tpu.memory_space<vmem>>, vector<1x16x256xf32>
    %59 = vector.shape_cast %58 : vector<1x16x256xf32> to vector<16x256xf32>
    %c1_31 = arith.constant 1 : index
    %c0_32 = arith.constant 0 : index
    %c0_33 = arith.constant 0 : index
    %60 = vector.load %arg2[%c1_31, %c0_32, %c0_33] : memref<2x16x256xf32, #tpu.memory_space<vmem>>, vector<1x16x256xf32>
    %61 = vector.shape_cast %60 : vector<1x16x256xf32> to vector<16x256xf32>
    %c1_34 = arith.constant 1 : index
    %c0_35 = arith.constant 0 : index
    %c0_36 = arith.constant 0 : index
    %62 = vector.load %arg3[%c1_34, %c0_35, %c0_36] : memref<2x16x256xf32, #tpu.memory_space<vmem>>, vector<1x16x256xf32>
    %63 = vector.shape_cast %62 : vector<1x16x256xf32> to vector<16x256xf32>
    %cst_37 = arith.constant 0.999899983 : f32
    %64 = vector.broadcast %cst_37 : f32 to vector<1x1xf32>
    %65 = arith.mulf %64, %57 : vector<1x1xf32>
    %cst_38 = arith.constant 1.000000e+00 : f32
    %66 = vector.broadcast %cst_38 : f32 to vector<1x1xf32>
    %67 = arith.subf %66, %65 : vector<1x1xf32>
    %68 = vector.broadcast %67 : vector<1x1xf32> to vector<16x256xf32>
    %69 = arith.mulf %68, %61 : vector<16x256xf32>
    %70 = vector.broadcast %57 : vector<1x1xf32> to vector<16x256xf32>
    %71 = arith.mulf %70, %59 : vector<16x256xf32>
    %72 = arith.addf %69, %71 : vector<16x256xf32>
    %cst_39 = arith.constant 0.999899983 : f32
    %73 = vector.broadcast %cst_39 : f32 to vector<16x256xf32>
    %74 = arith.mulf %73, %61 : vector<16x256xf32>
    %75 = arith.subf %59, %74 : vector<16x256xf32>
    %c1_40 = arith.constant 1 : index
    %c0_41 = arith.constant 0 : index
    %c0_42 = arith.constant 0 : index
    %76 = vector.load %arg9[%c1_40, %c0_41, %c0_42] : memref<2x16x256xf32, #tpu.memory_space<vmem>>, vector<1x16x256xf32>
    %77 = vector.shape_cast %76 : vector<1x16x256xf32> to vector<16x256xf32>
    %78 = vector.shape_cast %72 : vector<16x256xf32> to vector<1x16x256xf32>
    tpu.vector_store %arg9[%c1_40, %c0_41, %c0_42], %78 {strides = array<i32>} : memref<2x16x256xf32, #tpu.memory_space<vmem>>, vector<1x16x256xf32>,
    %c1_i32_43 = arith.constant 1 : i32
    %79 = tpu.dynamic_rotate %72 by %c1_i32_43 dim 1 : vector<16x256xf32>, i32 -> vector<16x256xf32>
    %80 = vector.broadcast %4 : vector<1x256xf32> to vector<16x256xf32>
    %81 = arith.mulf %79, %80 : vector<16x256xf32>
    %c255_i32_44 = arith.constant 255 : i32
    %82 = tpu.dynamic_rotate %72 by %c255_i32_44 dim 1 : vector<16x256xf32>, i32 -> vector<16x256xf32>
    %83 = vector.broadcast %8 : vector<1x256xf32> to vector<16x256xf32>
    %84 = arith.mulf %82, %83 : vector<16x256xf32>
    %85 = arith.truncf %81 : vector<16x256xf32> to vector<16x256xbf16>
    %c0_45 = arith.constant 0 : index
    %c256 = arith.constant 256 : index
    %86 = vector.load %arg11[%c0_45, %c256] : memref<96x512xbf16, #tpu.memory_space<vmem>>, vector<16x256xbf16>
    tpu.vector_store %arg11[%c0_45, %c256], %85 {strides = array<i32>} : memref<96x512xbf16, #tpu.memory_space<vmem>>, vector<16x256xbf16>,
    %87 = arith.truncf %72 : vector<16x256xf32> to vector<16x256xbf16>
    %c32_46 = arith.constant 32 : index
    %c256_47 = arith.constant 256 : index
    %88 = vector.load %arg11[%c32_46, %c256_47] : memref<96x512xbf16, #tpu.memory_space<vmem>>, vector<16x256xbf16>
    tpu.vector_store %arg11[%c32_46, %c256_47], %87 {strides = array<i32>} : memref<96x512xbf16, #tpu.memory_space<vmem>>, vector<16x256xbf16>,
    %89 = arith.truncf %84 : vector<16x256xf32> to vector<16x256xbf16>
    %c64_48 = arith.constant 64 : index
    %c256_49 = arith.constant 256 : index
    %90 = vector.load %arg11[%c64_48, %c256_49] : memref<96x512xbf16, #tpu.memory_space<vmem>>, vector<16x256xbf16>
    tpu.vector_store %arg11[%c64_48, %c256_49], %89 {strides = array<i32>} : memref<96x512xbf16, #tpu.memory_space<vmem>>, vector<16x256xbf16>,
    %c1_i32_50 = arith.constant 1 : i32
    %91 = tpu.dynamic_rotate %63 by %c1_i32_50 dim 1 : vector<16x256xf32>, i32 -> vector<16x256xf32>
    %92 = vector.broadcast %4 : vector<1x256xf32> to vector<16x256xf32>
    %93 = arith.mulf %91, %92 : vector<16x256xf32>
    %c255_i32_51 = arith.constant 255 : i32
    %94 = tpu.dynamic_rotate %63 by %c255_i32_51 dim 1 : vector<16x256xf32>, i32 -> vector<16x256xf32>
    %95 = vector.broadcast %8 : vector<1x256xf32> to vector<16x256xf32>
    %96 = arith.mulf %94, %95 : vector<16x256xf32>
    %97 = arith.truncf %93 : vector<16x256xf32> to vector<16x256xbf16>
    %c16_52 = arith.constant 16 : index
    %c256_53 = arith.constant 256 : index
    %98 = vector.load %arg11[%c16_52, %c256_53] : memref<96x512xbf16, #tpu.memory_space<vmem>>, vector<16x256xbf16>
    tpu.vector_store %arg11[%c16_52, %c256_53], %97 {strides = array<i32>} : memref<96x512xbf16, #tpu.memory_space<vmem>>, vector<16x256xbf16>,
    %99 = arith.truncf %63 : vector<16x256xf32> to vector<16x256xbf16>
    %c48_54 = arith.constant 48 : index
    %c256_55 = arith.constant 256 : index
    %100 = vector.load %arg11[%c48_54, %c256_55] : memref<96x512xbf16, #tpu.memory_space<vmem>>, vector<16x256xbf16>
    tpu.vector_store %arg11[%c48_54, %c256_55], %99 {strides = array<i32>} : memref<96x512xbf16, #tpu.memory_space<vmem>>, vector<16x256xbf16>,
    %101 = arith.truncf %96 : vector<16x256xf32> to vector<16x256xbf16>
    %c80_56 = arith.constant 80 : index
    %c256_57 = arith.constant 256 : index
    %102 = vector.load %arg11[%c80_56, %c256_57] : memref<96x512xbf16, #tpu.memory_space<vmem>>, vector<16x256xbf16>
    tpu.vector_store %arg11[%c80_56, %c256_57], %101 {strides = array<i32>} : memref<96x512xbf16, #tpu.memory_space<vmem>>, vector<16x256xbf16>,
    %c0_58 = arith.constant 0 : index
    %c0_59 = arith.constant 0 : index
    %c0_60 = arith.constant 0 : index
    %103 = vector.load %arg4[%c0_58, %c0_59, %c0_60] : memref<2x1x256xf32, #tpu.memory_space<vmem>>, vector<1x1x256xf32>
    %104 = vector.shape_cast %103 : vector<1x1x256xf32> to vector<1x256xf32>
    %c1_61 = arith.constant 1 : index
    %c0_62 = arith.constant 0 : index
    %c0_63 = arith.constant 0 : index
    %105 = vector.load %arg4[%c1_61, %c0_62, %c0_63] : memref<2x1x256xf32, #tpu.memory_space<vmem>>, vector<1x1x256xf32>
    %106 = vector.shape_cast %105 : vector<1x1x256xf32> to vector<1x256xf32>
    %107 = tpu.concatenate %104, %106 in 1 : vector<1x256xf32>, vector<1x256xf32> -> vector<1x512xf32>
    %c0_64 = arith.constant 0 : index
    %c0_65 = arith.constant 0 : index
    %c0_66 = arith.constant 0 : index
    %108 = vector.load %arg5[%c0_64, %c0_65, %c0_66] : memref<2x32x1xf32, #tpu.memory_space<vmem>>, vector<1x32x1xf32>
    %109 = vector.shape_cast %108 : vector<1x32x1xf32> to vector<32x1xf32>
    %110 = vector.shape_cast %109 : vector<32x1xf32> to vector<32x1xf32>
    %111 = vector.broadcast %110 : vector<32x1xf32> to vector<32x256xf32>
    %c1_67 = arith.constant 1 : index
    %c0_68 = arith.constant 0 : index
    %c0_69 = arith.constant 0 : index
    %112 = vector.load %arg5[%c1_67, %c0_68, %c0_69] : memref<2x32x1xf32, #tpu.memory_space<vmem>>, vector<1x32x1xf32>
    %113 = vector.shape_cast %112 : vector<1x32x1xf32> to vector<32x1xf32>
    %114 = vector.shape_cast %113 : vector<32x1xf32> to vector<32x1xf32>
    %115 = vector.broadcast %114 : vector<32x1xf32> to vector<32x256xf32>
    %116 = tpu.concatenate %111, %115 in 1 : vector<32x256xf32>, vector<32x256xf32> -> vector<32x512xf32>
    %c0_70 = arith.constant 0 : index
    %c0_71 = arith.constant 0 : index
    %117 = vector.load %arg6[%c0_70, %c0_71] : memref<32x96xbf16, #tpu.memory_space<vmem>>, vector<32x96xbf16>
    %c0_72 = arith.constant 0 : index
    %c0_73 = arith.constant 0 : index
    %118 = vector.load %arg11[%c0_72, %c0_73] : memref<96x512xbf16, #tpu.memory_space<vmem>>, vector<96x512xbf16>
    %cst_74 = arith.constant dense<0.000000e+00> : vector<32x512xf32>
    %119 = tpu.matmul %117, %118, %cst_74 {dimension_numbers = #tpu.dot_dimension_numbers<[1], [0], [0], [1], [0, 0, 1, 1], [], []>} : vector<32x96xbf16>, vector<96x512xbf16>, vector<32x512xf32> -> vector<32x512xf32>
    %120 = arith.addf %119, %116 : vector<32x512xf32>
    %121 = arith.negf %120 : vector<32x512xf32>
    %122 = math.exp %121 : vector<32x512xf32>
    %cst_75 = arith.constant 1.000000e+00 : f32
    %123 = vector.broadcast %cst_75 : f32 to vector<32x512xf32>
    %124 = arith.addf %123, %122 : vector<32x512xf32>
    %125 = arith.divf %123, %124 : vector<32x512xf32>
    %126 = arith.mulf %120, %125 : vector<32x512xf32>
    %127 = vector.broadcast %107 : vector<1x512xf32> to vector<32x512xf32>
    %128 = arith.mulf %126, %127 : vector<32x512xf32>
    %129 = vector.extract_strided_slice %128 {offsets = [0, 0], sizes = [32, 256], strides = [1, 1]} : vector<32x512xf32> to vector<32x256xf32>
    %c1_i32_76 = arith.constant 1 : i32
    %130 = tpu.dynamic_rotate %129 by %c1_i32_76 dim 1 : vector<32x256xf32>, i32 -> vector<32x256xf32>
    %131 = vector.broadcast %4 : vector<1x256xf32> to vector<32x256xf32>
    %132 = arith.mulf %130, %131 : vector<32x256xf32>
    %c255_i32_77 = arith.constant 255 : i32
    %133 = tpu.dynamic_rotate %129 by %c255_i32_77 dim 1 : vector<32x256xf32>, i32 -> vector<32x256xf32>
    %134 = vector.broadcast %8 : vector<1x256xf32> to vector<32x256xf32>
    %135 = arith.mulf %133, %134 : vector<32x256xf32>
    %136 = arith.truncf %132 : vector<32x256xf32> to vector<32x256xbf16>
    %c0_78 = arith.constant 0 : index
    %c0_79 = arith.constant 0 : index
    %137 = vector.load %arg12[%c0_78, %c0_79] : memref<96x512xbf16, #tpu.memory_space<vmem>>, vector<32x256xbf16>
    tpu.vector_store %arg12[%c0_78, %c0_79], %136 {strides = array<i32>} : memref<96x512xbf16, #tpu.memory_space<vmem>>, vector<32x256xbf16>,
    %138 = arith.truncf %129 : vector<32x256xf32> to vector<32x256xbf16>
    %c32_80 = arith.constant 32 : index
    %c0_81 = arith.constant 0 : index
    %139 = vector.load %arg12[%c32_80, %c0_81] : memref<96x512xbf16, #tpu.memory_space<vmem>>, vector<32x256xbf16>
    tpu.vector_store %arg12[%c32_80, %c0_81], %138 {strides = array<i32>} : memref<96x512xbf16, #tpu.memory_space<vmem>>, vector<32x256xbf16>,
    %140 = arith.truncf %135 : vector<32x256xf32> to vector<32x256xbf16>
    %c64_82 = arith.constant 64 : index
    %c0_83 = arith.constant 0 : index
    %141 = vector.load %arg12[%c64_82, %c0_83] : memref<96x512xbf16, #tpu.memory_space<vmem>>, vector<32x256xbf16>
    tpu.vector_store %arg12[%c64_82, %c0_83], %140 {strides = array<i32>} : memref<96x512xbf16, #tpu.memory_space<vmem>>, vector<32x256xbf16>,
    %142 = vector.extract_strided_slice %128 {offsets = [0, 256], sizes = [32, 256], strides = [1, 1]} : vector<32x512xf32> to vector<32x256xf32>
    %c1_i32_84 = arith.constant 1 : i32
    %143 = tpu.dynamic_rotate %142 by %c1_i32_84 dim 1 : vector<32x256xf32>, i32 -> vector<32x256xf32>
    %144 = vector.broadcast %4 : vector<1x256xf32> to vector<32x256xf32>
    %145 = arith.mulf %143, %144 : vector<32x256xf32>
    %c255_i32_85 = arith.constant 255 : i32
    %146 = tpu.dynamic_rotate %142 by %c255_i32_85 dim 1 : vector<32x256xf32>, i32 -> vector<32x256xf32>
    %147 = vector.broadcast %8 : vector<1x256xf32> to vector<32x256xf32>
    %148 = arith.mulf %146, %147 : vector<32x256xf32>
    %149 = arith.truncf %145 : vector<32x256xf32> to vector<32x256xbf16>
    %c0_86 = arith.constant 0 : index
    %c256_87 = arith.constant 256 : index
    %150 = vector.load %arg12[%c0_86, %c256_87] : memref<96x512xbf16, #tpu.memory_space<vmem>>, vector<32x256xbf16>
    tpu.vector_store %arg12[%c0_86, %c256_87], %149 {strides = array<i32>} : memref<96x512xbf16, #tpu.memory_space<vmem>>, vector<32x256xbf16>,
    %151 = arith.truncf %142 : vector<32x256xf32> to vector<32x256xbf16>
    %c32_88 = arith.constant 32 : index
    %c256_89 = arith.constant 256 : index
    %152 = vector.load %arg12[%c32_88, %c256_89] : memref<96x512xbf16, #tpu.memory_space<vmem>>, vector<32x256xbf16>
    tpu.vector_store %arg12[%c32_88, %c256_89], %151 {strides = array<i32>} : memref<96x512xbf16, #tpu.memory_space<vmem>>, vector<32x256xbf16>,
    %153 = arith.truncf %148 : vector<32x256xf32> to vector<32x256xbf16>
    %c64_90 = arith.constant 64 : index
    %c256_91 = arith.constant 256 : index
    %154 = vector.load %arg12[%c64_90, %c256_91] : memref<96x512xbf16, #tpu.memory_space<vmem>>, vector<32x256xbf16>
    tpu.vector_store %arg12[%c64_90, %c256_91], %153 {strides = array<i32>} : memref<96x512xbf16, #tpu.memory_space<vmem>>, vector<32x256xbf16>,
    %c0_92 = arith.constant 0 : index
    %c0_93 = arith.constant 0 : index
    %155 = vector.load %arg7[%c0_92, %c0_93] : memref<16x96xbf16, #tpu.memory_space<vmem>>, vector<16x96xbf16>
    %c0_94 = arith.constant 0 : index
    %c0_95 = arith.constant 0 : index
    %156 = vector.load %arg12[%c0_94, %c0_95] : memref<96x512xbf16, #tpu.memory_space<vmem>>, vector<96x512xbf16>
    %cst_96 = arith.constant dense<0.000000e+00> : vector<16x512xf32>
    %157 = tpu.matmul %155, %156, %cst_96 {dimension_numbers = #tpu.dot_dimension_numbers<[1], [0], [0], [1], [0, 0, 1, 1], [], []>} : vector<16x96xbf16>, vector<96x512xbf16>, vector<16x512xf32> -> vector<16x512xf32>
    %c0_97 = arith.constant 0 : index
    %c0_98 = arith.constant 0 : index
    %158 = vector.load %arg8[%c0_97, %c0_98] : memref<16x1xf32, #tpu.memory_space<vmem>>, vector<16x1xf32>
    %159 = vector.broadcast %158 : vector<16x1xf32> to vector<16x512xf32>
    %160 = arith.addf %157, %159 : vector<16x512xf32>
    %161 = vector.broadcast %107 : vector<1x512xf32> to vector<16x512xf32>
    %162 = arith.mulf %160, %161 : vector<16x512xf32>
    %cst_99 = arith.constant 0.000000e+00 : f32
    %163 = vector.broadcast %cst_99 : f32 to vector<1x1xf32>
    %164 = vector.extract_strided_slice %162 {offsets = [0, 0], sizes = [16, 256], strides = [1, 1]} : vector<16x512xf32> to vector<16x256xf32>
    %165 = arith.subf %164, %28 : vector<16x256xf32>
    %166 = arith.mulf %165, %165 : vector<16x256xf32>
    %167 = vector.shape_cast %166 : vector<16x256xf32> to vector<1x16x256xf32>
    %cst_100 = arith.constant dense<0.000000e+00> : vector<1xf32>
    %168 = vector.multi_reduction <add>, %167, %cst_100 [1, 2] : vector<1x16x256xf32> to vector<1xf32>
    %169 = vector.shape_cast %168 : vector<1xf32> to vector<1x1x1xf32>
    %170 = vector.extract %169[0, 0, 0] : f32 from vector<1x1x1xf32>
    %171 = vector.broadcast %170 : f32 to vector<1x1xf32>
    %172 = arith.addf %163, %171 : vector<1x1xf32>
    %173 = vector.extract_strided_slice %162 {offsets = [0, 256], sizes = [16, 256], strides = [1, 1]} : vector<16x512xf32> to vector<16x256xf32>
    %174 = arith.subf %173, %75 : vector<16x256xf32>
    %175 = arith.mulf %174, %174 : vector<16x256xf32>
    %176 = vector.shape_cast %175 : vector<16x256xf32> to vector<1x16x256xf32>
    %cst_101 = arith.constant dense<0.000000e+00> : vector<1xf32>
    %177 = vector.multi_reduction <add>, %176, %cst_101 [1, 2] : vector<1x16x256xf32> to vector<1xf32>
    %178 = vector.shape_cast %177 : vector<1xf32> to vector<1x1x1xf32>
    %179 = vector.extract %178[0, 0, 0] : f32 from vector<1x1x1xf32>
    %180 = vector.broadcast %179 : f32 to vector<1x1xf32>
    %181 = arith.addf %172, %180 : vector<1x1xf32>
    %c0_102 = arith.constant 0 : index
    %c0_103 = arith.constant 0 : index
    %182 = vector.load %arg10[%c0_102, %c0_103] : memref<1x1xf32, #tpu.memory_space<vmem>>, vector<1x1xf32>
    tpu.vector_store %arg10[%c0_102, %c0_103], %181 {strides = array<i32>} : memref<1x1xf32, #tpu.memory_space<vmem>>, vector<1x1xf32>,
    return
  }
}

</mosaic_0001>

<bundles_post_ra>
// kernel: cfm_forward.11
= control target key start
LH: loop header
LB: loop body
LE: loop exit
PB: predicated region body
PF: predicated region fallthrough
CT: control target
= control target key end

     0   :  { %16 = vsyncpa [#allocation5], 0  ;;  %v1918_v2 = vmov 0   ;;  %s1919_s25 = smov 127   ;;  %s2972_s0 = inlined_call_operand.vmem [shape: f32[2,1,1], index: 0, kind: input, shape index: {}]   ;;  %s2973_s1 = inlined_call_operand.vmem [shape: f32[2,16,256], index: 1, kind: input, shape index: {}]   ;;  %s2974_s2 = inlined_call_operand.vmem [shape: f32[2,16,256], index: 2, kind: input, shape index: {}]   ;;  %s2975_s3 = inlined_call_operand.vmem [shape: f32[2,16,256], index: 3, kind: input, shape index: {}]   ;;  %s2976_s4 = inlined_call_operand.vmem [shape: f32[2,1,256], index: 4, kind: input, shape index: {}]   ;;  %s2977_s5 = inlined_call_operand.vmem [shape: f32[2,32,1], index: 5, kind: input, shape index: {}]   ;;  %s2978_s6 = inlined_call_operand.vmem [shape: bf16[32,96], index: 6, kind: input, shape index: {}]   ;;  %s2979_s7 = inlined_call_operand.vmem [shape: bf16[16,96], index: 7, kind: input, shape index: {}]   ;;  %s2980_s8 = inlined_call_operand.vmem [shape: f32[16,1], index: 8, kind: input, shape index: {}]   ;;  %s2981_s9 = inlined_call_operand.hbm [shape: f32[2,16,256], index: 9, kind: output, shape index: {0}]   ;;  %s2982_s10 = inlined_call_operand.hbm [shape: f32[1,1], index: 10, kind: output, shape index: {1}]  }
   0x1   :  { %v1468_v0 = vld [vmem:[%s2972_s0 + $0x1] sm:$0x1]  ;;  %v52_v1 = vld [vmem:[%s2972_s0] sm:$0x1]  ;;  %1782 = vset.pattern.permute.xlu1 %v1918_v2  ;;  %1781 = vset.pattern.permute.xlu0 %v1918_v2  ;;  %v1478_v5 = vld [vmem:[%s2975_s3 + $0x28] sm:$0xff] }
   0x2   :  { %v210_v3 = vmul.f32 0.9999, %v1468_v0  ;;  %v65_v4 = vmul.f32 0.9999, %v52_v1  ;;  %1783 = vset.pattern.permute.xlu2 %v1918_v2  ;;  %v1480_v8 = vld [vmem:[%s2975_s3 + $0x38] sm:$0xff]  ;;  %v1477_v9 = vld [vmem:[%s2975_s3 + $0x20] sm:$0xff] }
   0x3   :  { %v1479_v10 = vld [vmem:[%s2975_s3 + $0x30] sm:$0xff]  ;;  %v329_v11 = vpack.c.bf16 %v1478_v5, %v1477_v9  ;;  %309 = vrot.lane.b32.xlu2 %v1477_v9, %s1919_s25 }
   0x4   :  { %v211_v6 = vsub.f32 1.0, %v210_v3  ;;  %v66_v7 = vsub.f32 1.0, %v65_v4  ;;  %v330_v12 = vpack.c.bf16 %v1480_v8, %v1479_v10 }
   0x5   :  { %17 = vsyncpa [#allocation7], 0  ;;  %331 = vst [vmem:[#allocation2 + $0x68] sm:$0xff] %v329_v11  ;;  %v61_v15 = vld [vmem:[%s2975_s3] sm:$0xff]  ;;  %v2006_v16 = vld [vmem:[%s2975_s3 + $0x18] sm:$0xff]  ;;  %vm557_vm4 = vcmask 785408  }
   0x6   :  { %v213_v13 = vperm.slane %v211_v6, 0  ;;  %v68_v14 = vperm.slane %v66_v7, 0  ;;  %332 = vst [vmem:[#allocation2 + $0x78] sm:$0xff] %v330_v12  ;;  %v63_v17 = vld [vmem:[%s2975_s3 + $0x10] sm:$0xff]  ;;  %v2014_v18 = vld [vmem:[%s2975_s3 + $0x8] sm:$0xff]  ;;  %s1920_s3 = smov 1  }
   0x7   :  { %v186_v19 = vpack.c.bf16 %v2006_v16, %v63_v17  ;;  %v185_v20 = vpack.c.bf16 %v2014_v18, %v61_v15  ;;  %v1784_v21 = vld [vmem:[%s2972_s0 + $0x1] ss:$0 sm:$0xff]  ;;  %v1785_v22 = vld [vmem:[%s2972_s0] ss:$0 sm:$0xff]  ;;  %v1474_v26 = vld [vmem:[%s2974_s2 + $0x28] sm:$0xff]  ;;  %s1438_s0 = sshll.u32 %s2981_s9, 4  ;;  %s1439_s0 = int_to_ptr.hbm [resolvable:$true] %s1438_s0 }
   0x8   :  { %215 = vperm.xlu0 %1781, %v213_v13   ;;  %70 = vperm.xlu1 %1782, %v68_v14   ;;  %v1473_v25 = vld [vmem:[%s2974_s2 + $0x20] sm:$0xff]  ;;  %v1475_v27 = vld [vmem:[%s2974_s2 + $0x30] sm:$0xff]  ;;  %v1476_v28 = vld [vmem:[%s2974_s2 + $0x38] sm:$0xff]  ;;  %s1922_s18 = smov [#allocation4]   ;;  %s1923_s20 = smov 256  }
   0x9   :  { %188 = vst [vmem:[#allocation2 + $0x70] sm:$0xff] %v186_v19  ;;  %v57_v29 = vld [vmem:[%s2974_s2] sm:$0xff]  ;;  %v58_v30 = vld [vmem:[%s2974_s2 + $0x8] sm:$0xff]  ;;  %v1471_v33 = vld [vmem:[%s2973_s1 + $0x30] sm:$0xff]  ;;  %s1436_s19 = sshll.u32 %s1922_s18, 4  ;;  %s1924_s21 = smov 16   ;;  %s1437_s19 = int_to_ptr.vmem [resolvable:$true] %s1436_s19 }
   0xa   :  { %187 = vst [vmem:[#allocation2 + $0x60] sm:$0xff] %v185_v20  ;;  %v1469_v31 = vld [vmem:[%s2973_s1 + $0x20] sm:$0xff]  ;;  %v1470_v32 = vld [vmem:[%s2973_s1 + $0x28] sm:$0xff]  ;;  %v1472_v34 = vld [vmem:[%s2973_s1 + $0x38] sm:$0xff]  ;;  %s1925_s9 = smov [#allocation6]   ;;  %s1452_s27 = sshll.u32 %s2982_s10, 4  ;;  %s1453_s27 = int_to_ptr.hbm [resolvable:$true] %s1452_s27 }
   0xb   :  { %311 = vrot.lane.b32.xlu2 %v1479_v10, %s1919_s25  ;;  %v53_v37 = vld [vmem:[%s2973_s1] sm:$0xff]  ;;  %v54_v38 = vld [vmem:[%s2973_s1 + $0x8] sm:$0xff]  ;;  %v59_v41 = vld [vmem:[%s2974_s2 + $0x10] sm:$0xff]  ;;  %s1450_s22 = sshll.u32 %s1925_s9, 4  ;;  %s1451_s22 = int_to_ptr.vmem [resolvable:$true] %s1450_s22 }
   0xc   :  { %v60_v46 = vld [vmem:[%s2974_s2 + $0x18] sm:$0xff]  ;;  %v55_v51 = vld [vmem:[%s2973_s1 + $0x10] sm:$0xff] }
   0xd   :  { %v56_v52 = vld [vmem:[%s2973_s1 + $0x18] sm:$0xff] }
  0x10   :  { %225 = vperm.xlu0 %1781, %v1784_v21   ;;  %80 = vperm.xlu1 %1782, %v1785_v22  }
  0x13   :  { %169 = vrot.lane.b32.xlu2 %v2014_v18, %s1919_s25 }
  0x18   :  { %313 = vrot.lane.b32.xlu0 %v1478_v5, %s1919_s25  ;;  %315 = vrot.lane.b32.xlu1 %v1480_v8, %s1919_s25 }
  0x1b   :  { %293 = vrot.lane.b32.xlu2 %v1477_v9, %s1920_s3 }
  0x20   :  { %165 = vrot.lane.b32.xlu0 %v61_v15, %s1919_s25  ;;  %167 = vrot.lane.b32.xlu1 %v63_v17, %s1919_s25 }
  0x23   :  { %299 = vrot.lane.b32.xlu2 %v1480_v8, %s1920_s3 }
  0x28   :  { %171 = vrot.lane.b32.xlu0 %v2006_v16, %s1919_s25  ;;  %297 = vrot.lane.b32.xlu1 %v1478_v5, %s1920_s3 }
  0x2b   :  { %151 = vrot.lane.b32.xlu2 %v63_v17, %s1920_s3 }
  0x30   :  { %295 = vrot.lane.b32.xlu0 %v1479_v10, %s1920_s3  ;;  %149 = vrot.lane.b32.xlu1 %v61_v15, %s1920_s3  ;;  %v37_v10 = vlaneseq  ;;  %v1921_v15 = vmov 0.0  }
  0x32   :  { %v2099_v11 = vand.u32 127, %v37_v10 }
  0x34   :  { %v39_v12 = vadd.s32 128, %v2099_v11  ;;  %vm128_vm0 = vcmp.lt.s32.totalorder %v2099_v11, 127  ;;  %vm40_vm2 = vcmp.gt.s32.totalorder %v2099_v11, 0  ;;  %vm111_vm3 = vcmp.lt.s32.totalorder %v2099_v11, 1 }
  0x36   :  { %vm47_vm1 = vcmp.lt.s32.totalorder %v39_v12, 255 }
  0x37   :  { %v2108_v17 = vsel %vm47_vm1, 1.0, %v1921_v15 }
  0x5d   :  { %v310_v7 = vpop.permute.xlu2 %309 }
  0x65   :  { %v312_v8 = vpop.permute.xlu2 %311 }
  0x6d   :  { %v170_v13 = vpop.permute.xlu2 %169 }
  0x7a   :  { %v216_v23 = vpop.permute.xlu0 %215  ;;  %v71_v24 = vpop.permute.xlu1 %70 }
  0x7b   :  { %v218_v35 = vmul.f32 %v1473_v25, %v216_v23  ;;  %v219_v36 = vmul.f32 %v1474_v26, %v216_v23  ;;  %v220_v39 = vmul.f32 %v1475_v27, %v216_v23  ;;  %v221_v40 = vmul.f32 %v1476_v28, %v216_v23 }
  0x7c   :  { %v73_v42 = vmul.f32 %v71_v24, %v57_v29  ;;  %v74_v43 = vmul.f32 %v71_v24, %v58_v30  ;;  %v75_v59 = vmul.f32 %v71_v24, %v59_v41  ;;  %v76_v60 = vmul.f32 %v71_v24, %v60_v46  ;;  %v294_v30 = vpop.permute.xlu2 %293 }
  0x82   :  { %v226_v44 = vpop.permute.xlu0 %225  ;;  %v81_v45 = vpop.permute.xlu1 %80 }
  0x83   :  { %v228_v47 = vmul.f32 %v1469_v31, %v226_v44  ;;  %v229_v48 = vmul.f32 %v1470_v32, %v226_v44  ;;  %v230_v49 = vmul.f32 %v1471_v33, %v226_v44  ;;  %v231_v50 = vmul.f32 %v1472_v34, %v226_v44 }
  0x84   :  { %v83_v53 = vmul.f32 %v81_v45, %v53_v37  ;;  %v84_v54 = vmul.f32 %v81_v45, %v54_v38  ;;  %v85_v61 = vmul.f32 %v81_v45, %v55_v51  ;;  %v86_v62 = vmul.f32 %v81_v45, %v56_v52  ;;  %v1484_v38 = vld [vmem:[%s2977_s5 + $0x30] sm:$0xff] }
  0x85   :  { %v232_v55 = vadd.f32 %v228_v47, %v218_v35  ;;  %v234_v56 = vadd.f32 %v230_v49, %v220_v39  ;;  %v233_v57 = vadd.f32 %v229_v48, %v219_v36  ;;  %v235_v58 = vadd.f32 %v231_v50, %v221_v40  ;;  %v1485_v39 = vld [vmem:[%s2977_s5 + $0x38] sm:$0xff]  ;;  %v300_v47 = vpop.permute.xlu2 %299 }
  0x86   :  { %v88_v0 = vadd.f32 %v84_v54, %v74_v43  ;;  %v87_v1 = vadd.f32 %v83_v53, %v73_v42  ;;  %v89_v3 = vadd.f32 %v85_v61, %v75_v59  ;;  %v90_v4 = vadd.f32 %v86_v62, %v76_v60 }
  0x87   :  { %245 = vst [vmem:[#allocation4 + $0x20] sm:$0xff] %v232_v55  ;;  %265 = vrot.lane.b32.xlu2 %v232_v55, %s1919_s25  ;;  %267 = vrot.lane.b32.xlu0 %v234_v56, %s1919_s25  ;;  %v285_v63 = vpack.c.bf16 %v233_v57, %v232_v55  ;;  %v286_v2 = vpack.c.bf16 %v235_v58, %v234_v56  ;;  %v2141_v45 = vsel %vm40_vm2, 1.0, %v1921_v15 }
  0x88   :  { %247 = vst [vmem:[#allocation4 + $0x30] sm:$0xff] %v234_v56  ;;  %269 = vrot.lane.b32.xlu1 %v233_v57, %s1919_s25  ;;  %v141_v5 = vpack.c.bf16 %v88_v0, %v87_v1  ;;  %v142_v6 = vpack.c.bf16 %v90_v4, %v89_v3 }
  0x89   :  { %246 = vst [vmem:[#allocation4 + $0x28] sm:$0xff] %v233_v57 }
  0x8a   :  { %287 = vst [vmem:[#allocation2 + $0x48] sm:$0xff] %v285_v63  ;;  %v314_v9 = vpop.permute.xlu0 %313  ;;  %v316_v21 = vpop.permute.xlu1 %315 }
  0x8b   :  { %248 = vst [vmem:[#allocation4 + $0x38] sm:$0xff] %v235_v58  ;;  %v319_v14 = vsel %vm128_vm0, %v314_v9, %v310_v7  ;;  %v317_v19 = vsel %vm128_vm0, %v310_v7, %v314_v9  ;;  %v318_v22 = vsel %vm128_vm0, %v312_v8, %v316_v21 }
  0x8c   :  { %288 = vst [vmem:[#allocation2 + $0x58] sm:$0xff] %v286_v2  ;;  %v322_v20 = vmul.f32 %v2108_v17, %v319_v14  ;;  %v351_v2 = vld [vmem:[%s2977_s5 + $0x8] sm:$0xff] }
  0x8d   :  { %100 = vst [vmem:[#allocation4 + $0x8] sm:$0xff] %v88_v0 }
  0x8e   :  { %99 = vst [vmem:[#allocation4] sm:$0xff] %v87_v1  ;;  %v333_v24 = vpack.c.bf16 %v322_v20, %v317_v19 }
  0x8f   :  { %271 = vrot.lane.b32.xlu2 %v235_v58, %s1919_s25  ;;  %124 = vrot.lane.b32.xlu0 %v88_v0, %s1919_s25  ;;  %143 = vst [vmem:[#allocation2 + $0x40] sm:$0xff] %v141_v5 }
  0x90   :  { %120 = vrot.lane.b32.xlu1 %v87_v1, %s1919_s25  ;;  %101 = vst [vmem:[#allocation4 + $0x10] sm:$0xff] %v89_v3 }
  0x91   :  { %102 = vst [vmem:[#allocation4 + $0x18] sm:$0xff] %v90_v4 }
  0x92   :  { %144 = vst [vmem:[#allocation2 + $0x50] sm:$0xff] %v142_v6  ;;  %v166_v23 = vpop.permute.xlu0 %165  ;;  %v168_v31 = vpop.permute.xlu1 %167  ;;  %1444 = dma.vmem_to_hbm [thread:$0]  %s1437_s19, 1024, %s1439_s0, [#allocation5], %s1923_s20, %s1923_s20, %s1924_s21  }
  0x93   :  { %v173_v26 = vsel %vm128_vm0, %v166_v23, %v170_v13  ;;  %v175_v27 = vsel %vm128_vm0, %v170_v13, %v166_v23  ;;  %335 = vst [vmem:[#allocation2 + $0xa8] sm:$0xff] %v333_v24 }
  0x97   :  { %122 = vrot.lane.b32.xlu2 %v89_v3, %s1919_s25  ;;  %249 = vrot.lane.b32.xlu0 %v232_v55, %s1920_s3  ;;  %v1483_v55 = vld [vmem:[%s2977_s5 + $0x28] sm:$0xff] }
  0x98   :  { %126 = vrot.lane.b32.xlu1 %v90_v4, %s1919_s25 }
  0x9a   :  { %v172_v32 = vpop.permute.xlu0 %171  ;;  %v1584_v36 = vld [vmem:[#allocation2 + $0xa8] sm:$0xf]  ;;  %v1741_v37 = vld [vmem:[#allocation2 + $0xac] sm:$0xf]  ;;  %v298_v46 = vpop.permute.xlu1 %297 }
  0x9b   :  { %v174_v33 = vsel %vm128_vm0, %v168_v31, %v172_v32  ;;  %v176_v34 = vsel %vm128_vm0, %v172_v32, %v168_v31  ;;  %v301_v49 = vsel %vm111_vm3, %v294_v30, %v298_v46  ;;  %v303_v50 = vsel %vm111_vm3, %v298_v46, %v294_v30  ;;  %v1733_v30 = vld [vmem:[#allocation2 + $0x6c] sm:$0xf] }
  0x9c   :  { %v180_v35 = vmul.f32 %v2108_v17, %v176_v34  ;;  %v305_v53 = vmul.f32 %v2141_v45, %v303_v50  ;;  %v1731_v50 = vld [vmem:[#allocation2 + $0x54] sm:$0xf0] }
  0x9e   :  { %v190_v40 = vpack.c.bf16 %v180_v35, %v174_v33  ;;  %v1554_v33 = vld [vmem:[#allocation2 + $0x78] sm:$0xf0] }
  0x9f   :  { %253 = vrot.lane.b32.xlu2 %v233_v57, %s1920_s3  ;;  %255 = vrot.lane.b32.xlu0 %v235_v58, %s1920_s3  ;;  %v352_v57 = vld [vmem:[%s2977_s5 + $0x10] sm:$0xff] }
  0xa0   :  { %251 = vrot.lane.b32.xlu1 %v234_v56, %s1920_s3  ;;  %192 = vst [vmem:[#allocation2 + $0xb0] sm:$0xff] %v190_v40  ;;  %v325_v56 = vpack.c.bf16 %v301_v49, %v305_v53 }
  0xa2   :  { %v296_v48 = vpop.permute.xlu0 %295  ;;  %327 = vst [vmem:[#allocation2 + $0x28] sm:$0xff] %v325_v56  ;;  %v2167_v5 = vpop.permute.xlu1 %149 }
  0xa3   :  { %v302_v51 = vsel %vm111_vm3, %v296_v48, %v300_v47  ;;  %v304_v52 = vsel %vm111_vm3, %v300_v47, %v296_v48  ;;  %v1536_v47 = vld [vmem:[#allocation2 + $0x48] sm:$0xf] }
  0xa4   :  { %v307_v54 = vmul.f32 %v2141_v45, %v304_v52  ;;  %v1538_v52 = vld [vmem:[#allocation2 + $0x58] sm:$0xf0] }
  0xa6   :  { %v326_v58 = vpack.c.bf16 %v302_v51, %v307_v54  ;;  %v1729_v51 = vld [vmem:[#allocation2 + $0x4c] sm:$0xf]  ;;  %v1537_v54 = vor.u32 %v1731_v50, %v1536_v47 }
  0xa7   :  { %153 = vrot.lane.b32.xlu0 %v2014_v18, %s1920_s3  ;;  %103 = vrot.lane.b32.xlu2 %v87_v1, %s1920_s3  ;;  %v320_v18 = vsel %vm128_vm0, %v316_v21, %v312_v8  ;;  %v1742_v60 = vld [vmem:[#allocation2 + $0xac] sm:$0xf0]  ;;  %v1578_v63 = vld [vmem:[#allocation2 + $0xb0] sm:$0xf0]  ;;  %v350_v1 = vld [vmem:[%s2977_s5] sm:$0xff] }
  0xa8   :  { %155 = vrot.lane.b32.xlu1 %v2006_v16, %s1920_s3  ;;  %v324_v25 = vmul.f32 %v2108_v17, %v320_v18  ;;  %v178_v16 = vmul.f32 %v2108_v17, %v175_v27  ;;  %328 = vst [vmem:[#allocation2 + $0x38] sm:$0xff] %v326_v58  ;;  %v1735_v27 = vld [vmem:[#allocation2 + $0x74] sm:$0xf0] }
  0xa9   :  { %v1520_v56 = vld [vmem:[#allocation2 + $0x28] sm:$0xf] }
  0xaa   :  { %v334_v28 = vpack.c.bf16 %v324_v25, %v318_v22  ;;  %v189_v29 = vpack.c.bf16 %v178_v16, %v173_v26  ;;  %v1552_v26 = vld [vmem:[#allocation2 + $0x68] sm:$0xf] }
  0xab   :  { %v1553_v40 = vor.u32 %v1735_v27, %v1552_v26 }
  0xac   :  { %336 = vst [vmem:[#allocation2 + $0xb8] sm:$0xff] %v334_v28 }
  0xad   :  { %191 = vst [vmem:[#allocation2 + $0xa0] sm:$0xff] %v189_v29 }
  0xaf   :  { %105 = vrot.lane.b32.xlu0 %v89_v3, %s1920_s3  ;;  %109 = vrot.lane.b32.xlu2 %v90_v4, %s1920_s3  ;;  %v2165_v3 = vpop.permute.xlu2 %151  ;;  %v1727_v58 = vld [vmem:[#allocation2 + $0x34] sm:$0xf0] }
  0xb0   :  { %107 = vrot.lane.b32.xlu1 %v88_v0, %s1920_s3 }
  0xb3   :  { %v1743_v41 = vld [vmem:[#allocation2 + $0xb4] sm:$0xf0]  ;;  %v1586_v42 = vld [vmem:[#allocation2 + $0xb8] sm:$0xf0] }
  0xb4   :  { %v1585_v43 = vor.u32 %v1743_v41, %v1584_v36  ;;  %v1589_v44 = vor.u32 %v1741_v37, %v1586_v42  ;;  %v1576_v59 = vld [vmem:[#allocation2 + $0xa0] sm:$0xf]  ;;  %v1740_v61 = vld [vmem:[#allocation2 + $0xa4] sm:$0xf]  ;;  %v1557_v41 = vor.u32 %v1733_v30, %v1554_v33  ;;  %v1530_v33 = vld [vmem:[#allocation2 + $0x50] sm:$0xf0] }
  0xb5   :  { %v1577_v62 = vor.u32 %v1742_v60, %v1576_v59  ;;  %v1581_v0 = vor.u32 %v1740_v61, %v1578_v63  ;;  %v1725_v59 = vld [vmem:[#allocation2 + $0x2c] sm:$0xf]  ;;  %v1522_v60 = vld [vmem:[#allocation2 + $0x38] sm:$0xf0] }
  0xb6   :  { %604 = vmatpush.bf16.msra.mxu2 %v1585_v43  ;;  %623 = vmatpush.bf16.msra.mxu3 %v1589_v44 }
  0xb7   :  { %391 = vperm.xlu0 %1781, %v1484_v38   ;;  %566 = vmatpush.bf16.msra.mxu0 %v1577_v62 }
  0xb8   :  { %396 = vperm.xlu1 %1782, %v1485_v39   ;;  %585 = vmatpush.bf16.msra.mxu1 %v1581_v0  ;;  %v1521_v0 = vor.u32 %v1727_v58, %v1520_v56 }
  0xbf   :  { %386 = vperm.xlu0 %1781, %v1483_v55   ;;  %v1541_v55 = vor.u32 %v1729_v51, %v1538_v52 }
  0xc0   :  { %366 = vperm.xlu1 %1782, %v352_v57  }
  0xc7   :  { %356 = vperm.xlu0 %1781, %v350_v1   ;;  %v1525_v1 = vor.u32 %v1725_v59, %v1522_v60 }
  0xc8   :  { %361 = vperm.xlu1 %1782, %v351_v2  }
  0xe1   :  { %v266_v4 = vpop.permute.xlu2 %265 }
  0xe9   :  { %v272_v6 = vpop.permute.xlu2 %271 }
  0xf1   :  { %v123_v21 = vpop.permute.xlu2 %122 }
  0xf9   :  { %v268_v7 = vpop.permute.xlu0 %267  ;;  %v254_v36 = vpop.permute.xlu2 %253 }
  0xfa   :  { %v276_v8 = vsel %vm128_vm0, %v272_v6, %v268_v7  ;;  %v270_v9 = vpop.permute.xlu1 %269  ;;  %v274_v13 = vsel %vm128_vm0, %v268_v7, %v272_v6  ;;  %v1734_v6 = vld [vmem:[#allocation2 + $0x6c] sm:$0xf0] }
  0xfb   :  { %v280_v10 = vmul.f32 %v2108_v17, %v276_v8  ;;  %v275_v12 = vsel %vm128_vm0, %v270_v9, %v266_v4  ;;  %v273_v19 = vsel %vm128_vm0, %v266_v4, %v270_v9  ;;  %v1544_v4 = vld [vmem:[#allocation2 + $0x60] sm:$0xf]  ;;  %v1732_v9 = vld [vmem:[#allocation2 + $0x64] sm:$0xf] }
  0xfc   :  { %v278_v14 = vmul.f32 %v2108_v17, %v275_v12 }
  0xfd   :  { %v290_v15 = vpack.c.bf16 %v280_v10, %v274_v13  ;;  %v1546_v10 = vld [vmem:[#allocation2 + $0x70] sm:$0xf0] }
  0xfe   :  { %v289_v20 = vpack.c.bf16 %v278_v14, %v273_v19 }
  0xff   :  { %292 = vst [vmem:[#allocation2 + $0x98] sm:$0xff] %v290_v15 }
 0x100   :  { %291 = vst [vmem:[#allocation2 + $0x88] sm:$0xff] %v289_v20 }
 0x101   :  { %v125_v22 = vpop.permute.xlu0 %124  ;;  %v104_v12 = vpop.permute.xlu2 %103 }
 0x102   :  { %v121_v18 = vpop.permute.xlu1 %120 }
 0x103   :  { %v131_v23 = vsel %vm128_vm0, %v125_v22, %v121_v18  ;;  %v129_v25 = vsel %vm128_vm0, %v121_v18, %v125_v22 }
 0x104   :  { %v134_v24 = vmul.f32 %v2108_v17, %v131_v23  ;;  %v1545_v23 = vor.u32 %v1734_v6, %v1544_v4  ;;  %v1719_v6 = vld [vmem:[%s2978_s6 + $0x8] sm:$0xff] }
 0x106   :  { %v145_v16 = vpack.c.bf16 %v134_v24, %v129_v25  ;;  %v1739_v28 = vld [vmem:[#allocation2 + $0x94] sm:$0xf0]  ;;  %v1570_v29 = vld [vmem:[#allocation2 + $0x98] sm:$0xf0]  ;;  %v1549_v24 = vor.u32 %v1732_v9, %v1546_v10 }
 0x107   :  { %v1568_v31 = vld [vmem:[#allocation2 + $0x88] sm:$0xf]  ;;  %v1737_v32 = vld [vmem:[#allocation2 + $0x8c] sm:$0xf] }
 0x108   :  { %147 = vst [vmem:[#allocation2 + $0x80] sm:$0xff] %v145_v16  ;;  %v1569_v34 = vor.u32 %v1739_v28, %v1568_v31  ;;  %v1573_v35 = vor.u32 %v1737_v32, %v1570_v29  ;;  %v1528_v28 = vld [vmem:[#allocation2 + $0x40] sm:$0xf]  ;;  %v1730_v31 = vld [vmem:[#allocation2 + $0x4c] sm:$0xf0] }
 0x109   :  { %v250_v37 = vpop.permute.xlu0 %249  ;;  %v1728_v32 = vld [vmem:[#allocation2 + $0x44] sm:$0xf] }
 0x10a   :  { %v259_v38 = vsel %vm111_vm3, %v254_v36, %v250_v37  ;;  %v127_v39 = vpop.permute.xlu1 %126  ;;  %605 = vmatpush.bf16.msra.mxu2 %v1569_v34  ;;  %624 = vmatpush.bf16.msra.mxu3 %v1573_v35  ;;  %v257_v44 = vsel %vm111_vm3, %v250_v37, %v254_v36 }
 0x10b   :  { %v261_v42 = vmul.f32 %v2141_v45, %v259_v38  ;;  %v132_v43 = vsel %vm128_vm0, %v127_v39, %v123_v21  ;;  %v130_v49 = vsel %vm128_vm0, %v123_v21, %v127_v39  ;;  %v1533_v39 = vor.u32 %v1728_v32, %v1530_v33 }
 0x10c   :  { %v136_v46 = vmul.f32 %v2108_v17, %v132_v43 }
 0x10d   :  { %v281_v48 = vpack.c.bf16 %v257_v44, %v261_v42  ;;  %v110_v42 = vpop.permute.xlu2 %109 }
 0x10e   :  { %v146_v53 = vpack.c.bf16 %v136_v46, %v130_v49  ;;  %606 = vmatpush.bf16.msra.mxu2 %v1553_v40  ;;  %625 = vmatpush.bf16.msra.mxu3 %v1557_v41  ;;  %v1718_v46 = vld [vmem:[%s2978_s6] sm:$0xff] }
 0x10f   :  { %283 = vst [vmem:[#allocation2 + $0x8] sm:$0xff] %v281_v48  ;;  %v1560_v8 = vld [vmem:[#allocation2 + $0x80] sm:$0xf]  ;;  %v1736_v14 = vld [vmem:[#allocation2 + $0x84] sm:$0xf] }
 0x110   :  { %148 = vst [vmem:[#allocation2 + $0x90] sm:$0xff] %v146_v53  ;;  %v1482_v53 = vld [vmem:[%s2977_s5 + $0x20] sm:$0xff] }
 0x111   :  { %v256_v57 = vpop.permute.xlu0 %255  ;;  %381 = vperm.xlu2 %1783, %v1482_v53  }
 0x112   :  { %v252_v61 = vpop.permute.xlu1 %251  ;;  %607 = vmatpush.bf16.msra.mxu2 %v1537_v54  ;;  %626 = vmatpush.bf16.msra.mxu3 %v1541_v55 }
 0x113   :  { %v260_v62 = vsel %vm111_vm3, %v256_v57, %v252_v61  ;;  %v258_v2 = vsel %vm111_vm3, %v252_v61, %v256_v57  ;;  %v353_v61 = vld [vmem:[%s2977_s5 + $0x18] sm:$0xff] }
 0x114   :  { %v263_v63 = vmul.f32 %v2141_v45, %v260_v62 }
 0x116   :  { %v282_v7 = vpack.c.bf16 %v258_v2, %v263_v63  ;;  %608 = vmatpush.bf16.msra.mxu2 %v1521_v0  ;;  %627 = vmatpush.bf16.msra.mxu3 %v1525_v1  ;;  %v1504_v35 = vld [vmem:[#allocation2 + $0x8] sm:$0xf]  ;;  %v1721_v36 = vld [vmem:[#allocation2 + $0xc] sm:$0xf] }
 0x117   :  { %v1738_v13 = vld [vmem:[#allocation2 + $0x8c] sm:$0xf0]  ;;  %v1562_v15 = vld [vmem:[#allocation2 + $0x90] sm:$0xf0] }
 0x118   :  { %284 = vst [vmem:[#allocation2 + $0x18] sm:$0xff] %v282_v7  ;;  %v1561_v19 = vor.u32 %v1738_v13, %v1560_v8  ;;  %v1565_v20 = vor.u32 %v1736_v14, %v1562_v15 }
 0x119   :  { %v154_v21 = vpop.permute.xlu0 %153  ;;  %371 = vperm.xlu2 %1783, %v353_v61  }
 0x11a   :  { %v159_v22 = vsel %vm111_vm3, %v154_v21, %v2167_v5  ;;  %v156_v18 = vpop.permute.xlu1 %155  ;;  %567 = vmatpush.bf16.msra.mxu0 %v1561_v19  ;;  %586 = vmatpush.bf16.msra.mxu1 %v1565_v20  ;;  %v157_v27 = vsel %vm111_vm3, %v2167_v5, %v154_v21  ;;  %v1529_v5 = vor.u32 %v1730_v31, %v1528_v28 }
 0x11b   :  { %v161_v25 = vmul.f32 %v2141_v45, %v159_v22  ;;  %v160_v26 = vsel %vm111_vm3, %v156_v18, %v2165_v3  ;;  %v158_v30 = vsel %vm111_vm3, %v2165_v3, %v156_v18 }
 0x11c   :  { %v163_v16 = vmul.f32 %v2141_v45, %v160_v26 }
 0x11d   :  { %v181_v29 = vpack.c.bf16 %v157_v27, %v161_v25 }
 0x11e   :  { %v182_v34 = vpack.c.bf16 %v158_v30, %v163_v16  ;;  %568 = vmatpush.bf16.msra.mxu0 %v1545_v23  ;;  %587 = vmatpush.bf16.msra.mxu1 %v1549_v24 }
 0x11f   :  { %183 = vst [vmem:[#allocation2 + $0x20] sm:$0xff] %v181_v29  ;;  %v1723_v37 = vld [vmem:[#allocation2 + $0x14] sm:$0xf0]  ;;  %v1506_v38 = vld [vmem:[#allocation2 + $0x18] sm:$0xf0] }
 0x120   :  { %184 = vst [vmem:[#allocation2 + $0x30] sm:$0xff] %v182_v34  ;;  %v1505_v40 = vor.u32 %v1723_v37, %v1504_v35  ;;  %v1509_v41 = vor.u32 %v1721_v36, %v1506_v38 }
 0x121   :  { %v106_v43 = vpop.permute.xlu0 %105 }
 0x122   :  { %v115_v3 = vsel %vm111_vm3, %v110_v42, %v106_v43  ;;  %v108_v44 = vpop.permute.xlu1 %107  ;;  %569 = vmatpush.bf16.msra.mxu0 %v1529_v5  ;;  %588 = vmatpush.bf16.msra.mxu1 %v1533_v39  ;;  %v113_v49 = vsel %vm111_vm3, %v106_v43, %v110_v42 }
 0x123   :  { %v118_v47 = vmul.f32 %v2141_v45, %v115_v3  ;;  %v114_v48 = vsel %vm111_vm3, %v108_v44, %v104_v12  ;;  %609 = vmatpush.bf16.msra.mxu2 %v1505_v40  ;;  %628 = vmatpush.bf16.msra.mxu3 %v1509_v41  ;;  %v112_v52 = vsel %vm111_vm3, %v104_v12, %v108_v44 }
 0x124   :  { %v116_v50 = vmul.f32 %v2141_v45, %v114_v48 }
 0x125   :  { %v138_v51 = vpack.c.bf16 %v113_v49, %v118_v47 }
 0x126   :  { %v137_v54 = vpack.c.bf16 %v112_v52, %v116_v50  ;;  %1594 = vmatmul.msk.bf16.vlgmr.msra.gmra.mxu2 %vm557_vm4, %v1718_v46  ;;  %1596 = vmatmul.msk.bf16.vlgmr.msra.gmra.mxu3 %vm557_vm4, %v1718_v46  ;;  %v1512_v55 = vld [vmem:[#allocation2 + $0x20] sm:$0xf]  ;;  %v1724_v56 = vld [vmem:[#allocation2 + $0x24] sm:$0xf] }
 0x127   :  { %140 = vst [vmem:[#allocation2 + $0x10] sm:$0xff] %v138_v51  ;;  %v1726_v57 = vld [vmem:[#allocation2 + $0x2c] sm:$0xf0]  ;;  %v1514_v58 = vld [vmem:[#allocation2 + $0x30] sm:$0xf0] }
 0x128   :  { %139 = vst [vmem:[#allocation2] sm:$0xff] %v137_v54  ;;  %v1513_v59 = vor.u32 %v1726_v57, %v1512_v55  ;;  %v1517_v60 = vor.u32 %v1724_v56, %v1514_v58 }
 0x129   :  { %v392_v7 = vpop.permute.xlu0 %391 }
 0x12a   :  { %570 = vmatpush.bf16.msra.mxu0 %v1513_v59  ;;  %589 = vmatpush.bf16.msra.mxu1 %v1517_v60  ;;  %v2249_v20 = vpop.permute.xlu1 %396 }
 0x12e   :  { %v1722_v62 = vld [vmem:[#allocation2 + $0xc] sm:$0xf0]  ;;  %v1498_v63 = vld [vmem:[#allocation2 + $0x10] sm:$0xf0] }
 0x12f   :  { %v1496_v0 = vld [vmem:[#allocation2] sm:$0xf]  ;;  %v1720_v1 = vld [vmem:[#allocation2 + $0x4] sm:$0xf] }
 0x130   :  { %v1497_v2 = vor.u32 %v1722_v62, %v1496_v0  ;;  %v1501_v4 = vor.u32 %v1720_v1, %v1498_v63 }
 0x131   :  { %v387_v8 = vpop.permute.xlu0 %386 }
 0x132   :  { %571 = vmatpush.bf16.msra.mxu0 %v1497_v2  ;;  %590 = vmatpush.bf16.msra.mxu1 %v1501_v4  ;;  %v2266_v35 = vpop.permute.xlu1 %366 }
 0x135   :  { %1590 = vmatmul.msk.bf16.vlgmr.msra.gmra.mxu0 %vm557_vm4, %v1718_v46  ;;  %1592 = vmatmul.msk.bf16.vlgmr.msra.gmra.mxu1 %vm557_vm4, %v1718_v46 }
 0x136   :  { %1595 = vmatmul.msk.bf16.gmra.mxu2 %vm557_vm4, %v1719_v6  ;;  %1597 = vmatmul.msk.bf16.gmra.mxu3 %vm557_vm4, %v1719_v6 }
 0x139   :  { %v357_v21 = vpop.permute.xlu0 %356 }
 0x13a   :  { %v362_v57 = vpop.permute.xlu1 %361 }
 0x145   :  { %1591 = vmatmul.msk.bf16.gmra.mxu0 %vm557_vm4, %v1719_v6  ;;  %1593 = vmatmul.msk.bf16.gmra.mxu1 %vm557_vm4, %v1719_v6 }
 0x16b   :  { %v382_v9 = vpop.permute.xlu2 %381 }
 0x1a9   :  { %v611_v10 = vpop.f32.mrf.mxu2  ;;  %v630_v12 = vpop.f32.mrf.mxu3 }
 0x1aa   :  { %v2243_v13 = vadd.f32 %v611_v10, %v382_v9  ;;  %v2245_v14 = vadd.f32 %v630_v12, %v382_v9 }
 0x1ac   :  { %v1600_v15 = vmul.f32 -1.442695, %v2243_v13  ;;  %v1601_v19 = vmul.f32 -1.442695, %v2245_v14 }
 0x1ae   :  { %1786 = vpow2.f32 %v1600_v15 }
 0x1af   :  { %1788 = vpow2.f32 %v1601_v19 }
 0x1b1   :  { %v613_v22 = vpop.f32.mrf.mxu2  ;;  %v632_v18 = vpop.f32.mrf.mxu3 }
 0x1b2   :  { %v2251_v23 = vadd.f32 %v613_v22, %v387_v8  ;;  %v2253_v24 = vadd.f32 %v632_v18, %v387_v8  ;;  %v573_v25 = vpop.f32.mrf.mxu0  ;;  %v592_v26 = vpop.f32.mrf.mxu1 }
 0x1b3   :  { %v2255_v27 = vadd.f32 %v573_v25, %v357_v21  ;;  %v2261_v32 = vadd.f32 %v592_v26, %v357_v21 }
 0x1b4   :  { %v1787_v16 = vpop.eup %1786  ;;  %v1604_v28 = vmul.f32 -1.442695, %v2251_v23  ;;  %v1605_v31 = vmul.f32 -1.442695, %v2253_v24 }
 0x1b5   :  { %v1789_v29 = vpop.eup %1788  ;;  %v2258_v30 = vadd.f32 1.0, %v1787_v16  ;;  %v1598_v34 = vmul.f32 -1.442695, %v2255_v27  ;;  %v1599_v36 = vmul.f32 -1.442695, %v2261_v32 }
 0x1b6   :  { %v2263_v33 = vadd.f32 1.0, %v1789_v29  ;;  %1790 = vpow2.f32 %v1604_v28 }
 0x1b7   :  { %1792 = vrcp.f32 %v2258_v30  ;;  %v743_v47 = vand.u32 2147483647, %v2258_v30  ;;  %v745_v48 = vand.u32 2147483648, %v2258_v30  ;;  %vm739_vm5 = vweird.f32 %v2258_v30 }
 0x1b8   :  { %1794 = vrcp.f32 %v2263_v33  ;;  %v758_v53 = vand.u32 2147483647, %v2263_v33  ;;  %v760_v54 = vand.u32 2147483648, %v2263_v33  ;;  %vm754_vm6 = vweird.f32 %v2263_v33 }
 0x1b9   :  { %1796 = vpow2.f32 %v1605_v31  ;;  %v616_v37 = vpop.f32.mrf.mxu2  ;;  %v635_v5 = vpop.f32.mrf.mxu3  ;;  %vm2302_vm7 = vcmp.eq.f32.partialorder %v743_v47, 8.507059e+37 }
 0x1ba   :  { %1798 = vpow2.f32 %v1598_v34  ;;  %v2271_v38 = vadd.f32 %v616_v37, %v392_v7  ;;  %v2278_v43 = vadd.f32 %v635_v5, %v392_v7  ;;  %v575_v50 = vpop.f32.mrf.mxu0  ;;  %v594_v56 = vpop.f32.mrf.mxu1  ;;  %v746_v7 = vor.u32 1.1754944e-38, %v745_v48 }
 0x1bb   :  { %1800 = vpow2.f32 %v1599_v36  ;;  %v2300_v62 = vadd.f32 %v575_v50, %v362_v57  ;;  %v2308_v4 = vadd.f32 %v594_v56, %v362_v57  ;;  %vm2310_vm8 = vcmp.eq.f32.partialorder %v758_v53, 8.507059e+37 }
 0x1bc   :  { %v1791_v39 = vpop.eup %1790  ;;  %v1608_v40 = vmul.f32 -1.442695, %v2271_v38  ;;  %v1609_v60 = vmul.f32 -1.442695, %v2278_v43  ;;  %v761_v9 = vor.u32 1.1754944e-38, %v760_v54 }
 0x1bd   :  { %v2274_v41 = vpop.eup %1792  ;;  %v2276_v42 = vadd.f32 1.0, %v1791_v39  ;;  %v1602_v22 = vmul.f32 -1.442695, %v2300_v62  ;;  %v2329_v26 = vmul.f32 -1.442695, %v2308_v4 }
 0x1be   :  { %v2280_v3 = vpop.eup %1794  ;;  %v735_v44 = vmul.f32 %v2274_v41, %v2258_v30  ;;  %1802 = vpow2.f32 %v1608_v40  ;;  %vm740_vm9 = vweird.f32 %v2274_v41 }
 0x1bf   :  { %v1797_v46 = vpop.eup %1796  ;;  %v750_v49 = vmul.f32 %v2280_v3, %v2263_v33  ;;  %1804 = vrcp.f32 %v2276_v42  ;;  %v805_v2 = vand.u32 2147483648, %v2276_v42  ;;  %v803_v15 = vand.u32 2147483647, %v2276_v42  ;;  %vm2335_vm12 = vmor %vm739_vm5, %vm740_vm9 }
 0x1c0   :  { %v1799_v51 = vpop.eup %1798  ;;  %v736_v52 = vsub.f32 1.0, %v735_v44  ;;  %v2291_v55 = vadd.f32 1.0, %v1797_v46  ;;  %vm755_vm10 = vweird.f32 %v2280_v3  ;;  %vm799_vm11 = vweird.f32 %v2276_v42 }
 0x1c1   :  { %v751_v58 = vsub.f32 1.0, %v750_v49  ;;  %v2294_v59 = vadd.f32 1.0, %v1799_v51  ;;  %v1801_v63 = vpop.eup %1800  ;;  %v806_v18 = vor.u32 1.1754944e-38, %v805_v2  ;;  %vm2351_vm14 = vmor %vm754_vm6, %vm755_vm10  ;;  %vm2355_vm15 = vcmp.eq.f32.partialorder %v803_v15, 8.507059e+37  ;;  %v618_v0 = vpop.f32.mrf.mxu2 }
 0x1c2   :  { %v737_v61 = vmul.f32 %v2274_v41, %v736_v52  ;;  %1806 = vrcp.f32 %v2291_v55  ;;  %v2326_v25 = vadd.f32 1.0, %v1801_v63  ;;  %vm814_vm13 = vweird.f32 %v2291_v55  ;;  %v578_v8 = vpop.f32.mrf.mxu0 }
 0x1c3   :  { %v752_v1 = vmul.f32 %v2280_v3, %v751_v58  ;;  %1808 = vrcp.f32 %v2294_v59  ;;  %v818_v31 = vand.u32 2147483647, %v2291_v55  ;;  %v820_v34 = vand.u32 2147483648, %v2291_v55 }
 0x1c4   :  { %v1803_v6 = vpop.eup %1802  ;;  %v738_v12 = vadd.f32 %v2274_v41, %v737_v61  ;;  %1810 = vpow2.f32 %v1609_v60  ;;  %v715_v40 = vand.u32 2147483648, %v2294_v59  ;;  %vm709_vm1 = vweird.f32 %v2294_v59 }
 0x1c5   :  { %v2315_v10 = vpop.eup %1804  ;;  %v753_v19 = vadd.f32 %v2280_v3, %v752_v1  ;;  %v2342_v36 = vadd.f32 1.0, %v1803_v6  ;;  %1812 = vrcp.f32 %v2326_v25  ;;  %v713_v46 = vand.u32 2147483647, %v2294_v59 }
 0x1c6   :  { %v795_v21 = vmul.f32 %v2315_v10, %v2276_v42  ;;  %v742_v37 = vsel %vm2335_vm12, %v2274_v41, %v738_v12  ;;  %vm800_vm2 = vweird.f32 %v2315_v10  ;;  %vm2378_vm5 = vcmp.eq.f32.partialorder %v818_v31, 8.507059e+37 }
 0x1c7   :  { %v757_v33 = vsel %vm2351_vm14, %v2280_v3, %v753_v19  ;;  %1814 = vrcp.f32 %v2342_v36  ;;  %v747_v50 = vsel %vm2302_vm7, %v746_v7, %v742_v37  ;;  %v821_v52 = vor.u32 1.1754944e-38, %v820_v34  ;;  %vm2387_vm6 = vmor %vm799_vm11, %vm800_vm2  ;;  %v637_v37 = vpop.f32.mrf.mxu3 }
 0x1c8   :  { %v2331_v16 = vpop.eup %1806  ;;  %v796_v29 = vsub.f32 1.0, %v795_v21  ;;  %v762_v53 = vsel %vm2310_vm8, %v761_v9, %v757_v33  ;;  %v716_v57 = vor.u32 1.1754944e-38, %v715_v40  ;;  %vm2392_vm9 = vcmp.eq.f32.partialorder %v713_v46, 8.507059e+37  ;;  %v597_v40 = vpop.f32.mrf.mxu1 }
 0x1c9   :  { %v810_v39 = vmul.f32 %v2331_v16, %v2291_v55  ;;  %v2363_v41 = vpop.eup %1808  ;;  %vm815_vm7 = vweird.f32 %v2331_v16  ;;  %v728_v61 = vand.u32 2147483647, %v2326_v25  ;;  %1816 = vpow2.f32 %v1602_v22 }
 0x1ca   :  { %v797_v44 = vmul.f32 %v2315_v10, %v796_v29  ;;  %v1811_v47 = vpop.eup %1810  ;;  %v705_v49 = vmul.f32 %v2363_v41, %v2294_v59  ;;  %v730_v7 = vand.u32 2147483648, %v2326_v25  ;;  %v2408_v9 = vmul.f32 %v747_v50, %v2243_v13  ;;  %vm2422_vm10 = vmor %vm814_vm13, %vm815_vm7 }
 0x1cb   :  { %v811_v48 = vsub.f32 1.0, %v810_v39  ;;  %v2397_v63 = vadd.f32 1.0, %v1811_v47  ;;  %v2399_v1 = vpop.eup %1812  ;;  %v2411_v12 = vmul.f32 %v762_v53, %v2245_v14  ;;  %vm710_vm8 = vweird.f32 %v2363_v41 }
 0x1cc   :  { %v798_v3 = vadd.f32 %v2315_v10, %v797_v44  ;;  %v706_v56 = vsub.f32 1.0, %v705_v49  ;;  %v720_v15 = vmul.f32 %v2399_v1, %v2326_v25  ;;  %vm724_vm11 = vweird.f32 %v2326_v25  ;;  %vm2441_vm12 = vmor %vm709_vm1, %vm710_vm8  ;;  %v580_v25 = vpop.f32.mrf.mxu0 }
 0x1cd   :  { %v812_v54 = vmul.f32 %v2331_v16, %v811_v48  ;;  %v2416_v19 = vpop.eup %1814  ;;  %1818 = vrcp.f32 %v2397_v63  ;;  %v2430_v14 = vadd.f32 %v618_v0, %v2249_v20  ;;  %vm2445_vm13 = vcmp.eq.f32.partialorder %v728_v61, 8.507059e+37 }
 0x1ce   :  { %v802_v42 = vsel %vm2387_vm6, %v2315_v10, %v798_v3  ;;  %v707_v6 = vmul.f32 %v2363_v41, %v706_v56  ;;  %v721_v22 = vsub.f32 1.0, %v720_v15  ;;  %v855_v28 = vmul.f32 %v2416_v19, %v2342_v36 }
 0x1cf   :  { %v813_v2 = vadd.f32 %v2331_v16, %v812_v54  ;;  %v807_v21 = vsel %vm2355_vm15, %v806_v18, %v802_v42  ;;  %v731_v34 = vor.u32 1.1754944e-38, %v730_v7  ;;  %vm859_vm14 = vweird.f32 %v2342_v36  ;;  %v1817_v30 = vpop.eup %1816  ;;  %v372_v42 = vpop.permute.xlu2 %371 }
 0x1d0   :  { %v708_v13 = vadd.f32 %v2363_v41, %v707_v6  ;;  %v863_v18 = vand.u32 2147483647, %v2342_v36  ;;  %v722_v5 = vmul.f32 %v2399_v1, %v721_v22  ;;  %v856_v39 = vsub.f32 1.0, %v855_v28  ;;  %v599_v29 = vpop.f32.mrf.mxu1 }
 0x1d1   :  { %v817_v55 = vsel %vm2422_vm10, %v2331_v16, %v813_v2  ;;  %v865_v16 = vand.u32 2147483648, %v2342_v36  ;;  %1820 = vpow2.f32 %v2329_v26  ;;  %v2458_v33 = vmul.f32 %v807_v21, %v2251_v23 }
 0x1d2   :  { %v712_v59 = vsel %vm2441_vm12, %v2363_v41, %v708_v13  ;;  %v822_v44 = vsel %vm2378_vm5, %v821_v52, %v817_v55  ;;  %vm725_vm15 = vweird.f32 %v2399_v1  ;;  %v2463_v46 = vadd.f32 1.0, %v1817_v30 }
 0x1d3   :  { %v723_v47 = vadd.f32 %v2399_v1, %v722_v5  ;;  %v857_v41 = vmul.f32 %v2416_v19, %v856_v39  ;;  %v1612_v48 = vmul.f32 -1.442695, %v2430_v14  ;;  %v2469_v49 = vadd.f32 %v637_v37, %v2249_v20  ;;  %v2471_v26 = vpop.eup %1818  ;;  %vm2486_vm2 = vmor %vm724_vm11, %vm725_vm15  ;;  %v2563_v39 = vld [vmem:[%s2976_s4 + $0x2] sm:$0x3] }
 0x1d4   :  { %v717_v23 = vsel %vm2392_vm9, %v716_v57, %v712_v59  ;;  %vm2475_vm1 = vcmp.eq.f32.partialorder %v863_v18, 8.507059e+37  ;;  %v866_v3 = vor.u32 1.1754944e-38, %v865_v16  ;;  %v878_v51 = vand.u32 2147483647, %v2397_v63  ;;  %v2644_v59 = vld [vmem:[%s2976_s4] sm:$0x3] }
 0x1d5   :  { %1822 = vrcp.f32 %v2463_v46  ;;  %v2482_v52 = vmul.f32 %v822_v44, %v2253_v24  ;;  %vm860_vm5 = vweird.f32 %v2416_v19  ;;  %v870_v53 = vmul.f32 %v2471_v26, %v2397_v63 }
 0x1d6   :  { %vm874_vm6 = vweird.f32 %v2397_v63  ;;  %v727_v54 = vsel %vm2486_vm2, %v2399_v1, %v723_v47  ;;  %v858_v24 = vadd.f32 %v2416_v19, %v857_v41  ;;  %v880_v56 = vand.u32 2147483648, %v2397_v63  ;;  %vm2523_vm9 = vmor %vm859_vm14, %vm860_vm5 }
 0x1d7   :  { %1824 = vpow2.f32 %v1612_v48  ;;  %v1821_v57 = vpop.eup %1820  ;;  %v2500_v58 = vmul.f32 %v717_v23, %v2255_v27  ;;  %v871_v60 = vsub.f32 1.0, %v870_v53  ;;  %v773_v61 = vand.u32 2147483647, %v2463_v46 }
 0x1d8   :  { %v1613_v0 = vmul.f32 -1.442695, %v2469_v49  ;;  %vm2504_vm7 = vcmp.eq.f32.partialorder %v878_v51, 8.507059e+37  ;;  %v775_v1 = vand.u32 2147483648, %v2463_v46  ;;  %v2509_v6 = vadd.f32 1.0, %v1821_v57 }
 0x1d9   :  { %v2512_v7 = vadd.f32 %v578_v8, %v2266_v35  ;;  %v2515_v27 = vadd.f32 %v597_v40, %v2266_v35  ;;  %v732_v15 = vsel %vm2445_vm13, %v731_v34, %v727_v54  ;;  %v872_v13 = vmul.f32 %v2471_v26, %v871_v60 }
 0x1da   :  { %1826 = vpow2.f32 %v1613_v0  ;;  %v2528_v21 = vadd.f32 %v580_v25, %v372_v42  ;;  %v862_v35 = vsel %vm2523_vm9, %v2416_v19, %v858_v24  ;;  %vm875_vm8 = vweird.f32 %v2471_v26 }
 0x1db   :  { %v1823_v8 = vpop.eup %1822  ;;  %v881_v55 = vor.u32 1.1754944e-38, %v880_v56  ;;  %1828 = vrcp.f32 %v2509_v6  ;;  %v873_v36 = vadd.f32 %v2471_v26, %v872_v13  ;;  %vm769_vm10 = vweird.f32 %v2463_v46  ;;  %vm2554_vm12 = vmor %vm874_vm6, %vm875_vm8 }
 0x1dc   :  { %v765_v22 = vmul.f32 %v1823_v8, %v2463_v46  ;;  %v1606_v28 = vmul.f32 -1.442695, %v2512_v7  ;;  %v2540_v34 = vmul.f32 %v732_v15, %v2261_v32  ;;  %vm2542_vm11 = vcmp.eq.f32.partialorder %v773_v61, 8.507059e+37 }
 0x1dd   :  { %v1825_v31 = vpop.eup %1824  ;;  %v776_v18 = vor.u32 1.1754944e-38, %v775_v1  ;;  %v1607_v16 = vmul.f32 -1.442695, %v2515_v27  ;;  %v1610_v37 = vmul.f32 -1.442695, %v2528_v21  ;;  %v867_v30 = vsel %vm2475_vm1, %v866_v3, %v862_v35 }
 0x1de   :  { %v766_v32 = vsub.f32 1.0, %v765_v22  ;;  %v2558_v5 = vadd.f32 1.0, %v1825_v31  ;;  %1830 = vpow2.f32 %v1606_v28  ;;  %v877_v40 = vsel %vm2554_vm12, %v2471_v26, %v873_v36 }
 0x1df   :  { %v788_v44 = vand.u32 2147483647, %v2509_v6  ;;  %1832 = vpow2.f32 %v1607_v16  ;;  %v2569_v63 = vadd.f32 %v599_v29, %v372_v42  ;;  %vm770_vm13 = vweird.f32 %v1823_v8 }
 0x1e0   :  { %v1827_v47 = vpop.eup %1826  ;;  %v767_v41 = vmul.f32 %v1823_v8, %v766_v32  ;;  %v790_v48 = vand.u32 2147483648, %v2509_v6  ;;  %1834 = vrcp.f32 %v2558_v5  ;;  %v2576_v50 = vmul.f32 %v867_v30, %v2271_v38  ;;  %vm2588_vm14 = vmor %vm769_vm10, %vm770_vm13 }
 0x1e1   :  { %v2573_v23 = vpop.eup %1828  ;;  %v2578_v3 = vadd.f32 1.0, %v1827_v47  ;;  %1836 = vpow2.f32 %v1610_v37  ;;  %v346_v26 = vperm.slane %v2563_v39, 0  ;;  %v882_v51 = vsel %vm2504_vm7, %v881_v55, %v877_v40 }
 0x1e2   :  { %v768_v20 = vadd.f32 %v1823_v8, %v767_v41  ;;  %v780_v53 = vmul.f32 %v2573_v23, %v2509_v6  ;;  %v1611_v54 = vmul.f32 -1.442695, %v2569_v63  ;;  %vm784_vm15 = vweird.f32 %v2509_v6 }
 0x1e3   :  { %v923_v38 = vand.u32 2147483647, %v2558_v5  ;;  %v925_v56 = vand.u32 2147483648, %v2558_v5  ;;  %1838 = vrcp.f32 %v2578_v3  ;;  %vm2598_vm1 = vcmp.eq.f32.partialorder %v788_v44, 8.507059e+37 }
 0x1e4   :  { %v1831_v25 = vpop.eup %1830  ;;  %v772_v57 = vsel %vm2588_vm14, %v1823_v8, %v768_v20  ;;  %v781_v60 = vsub.f32 1.0, %v780_v53  ;;  %v791_v46 = vor.u32 1.1754944e-38, %v790_v48  ;;  %v2603_v42 = vmul.f32 %v882_v51, %v2278_v43 }
 0x1e5   :  { %v1833_v0 = vpop.eup %1832  ;;  %vm919_vm2 = vweird.f32 %v2558_v5  ;;  %v2606_v2 = vadd.f32 1.0, %v1831_v25  ;;  %v2608_v1 = vperm.slane %v346_v26, 0  ;;  %v777_v10 = vsel %vm2542_vm11, %v776_v18, %v772_v57 }
 0x1e6   :  { %v1835_v15 = vpop.eup %1834  ;;  %v782_v13 = vmul.f32 %v2573_v23, %v781_v60  ;;  %vm785_vm5 = vweird.f32 %v2573_v23  ;;  %1840 = vpow2.f32 %v1611_v54  ;;  %vm2615_vm6 = vcmp.eq.f32.partialorder %v923_v38, 8.507059e+37 }
 0x1e7   :  { %v1837_v8 = vpop.eup %1836  ;;  %v915_v35 = vmul.f32 %v1835_v15, %v2558_v5  ;;  %v926_v55 = vor.u32 1.1754944e-38, %v925_v56  ;;  %v938_v36 = vand.u32 2147483647, %v2578_v3  ;;  %1842 = vrcp.f32 %v2606_v2  ;;  %vm2631_vm9 = vmor %vm784_vm15, %vm785_vm5 }
 0x1e8   :  { %v783_v22 = vadd.f32 %v2573_v23, %v782_v13  ;;  %vm934_vm7 = vweird.f32 %v2578_v3  ;;  %v940_v28 = vand.u32 2147483648, %v2578_v3  ;;  %v2624_v29 = vadd.f32 1.0, %v1833_v0 }
 0x1e9   :  { %v1839_v31 = vpop.eup %1838  ;;  %v2627_v19 = vmul.f32 %v777_v10, %v2300_v62  ;;  %v916_v16 = vsub.f32 1.0, %v915_v35  ;;  %v2635_v37 = vadd.f32 1.0, %v1837_v8  ;;  %v2639_v30 = vmul.f32 %v2608_v1, %v2408_v9 }
 0x1ea   :  { %v787_v62 = vsel %vm2631_vm9, %v2573_v23, %v783_v22  ;;  %v930_v6 = vmul.f32 %v1839_v31, %v2578_v3  ;;  %v833_v32 = vand.u32 2147483647, %v2606_v2  ;;  %v835_v40 = vand.u32 2147483648, %v2606_v2 }
 0x1eb   :  { %v917_v44 = vmul.f32 %v1835_v15, %v916_v16  ;;  %vm920_vm8 = vweird.f32 %v1835_v15  ;;  %vm2652_vm10 = vcmp.eq.f32.partialorder %v938_v36, 8.507059e+37  ;;  %1844 = vrcp.f32 %v2624_v29  ;;  %1100 = vrot.lane.b32.xlu0 %v2639_v30, %s1919_s25 }
 0x1ec   :  { %v1841_v47 = vpop.eup %1840  ;;  %v931_v41 = vsub.f32 1.0, %v930_v6  ;;  %v941_v48 = vor.u32 1.1754944e-38, %v940_v28  ;;  %vm829_vm11 = vweird.f32 %v2606_v2  ;;  %v341_v23 = vperm.slane %v2644_v59, 0  ;;  %vm921_vm13 = vmor %vm919_vm2, %vm920_vm8 }
 0x1ed   :  { %v1843_v26 = vpop.eup %1842  ;;  %v792_v51 = vsel %vm2598_vm1, %v791_v46, %v787_v62  ;;  %v918_v20 = vadd.f32 %v1835_v15, %v917_v44  ;;  %vm935_vm12 = vweird.f32 %v1839_v31  ;;  %1846 = vrcp.f32 %v2635_v37 }
 0x1ee   :  { %v932_v53 = vmul.f32 %v1839_v31, %v931_v41  ;;  %v825_v54 = vmul.f32 %v1843_v26, %v2606_v2  ;;  %vm2667_vm14 = vcmp.eq.f32.partialorder %v833_v32, 8.507059e+37  ;;  %v836_v38 = vor.u32 1.1754944e-38, %v835_v40  ;;  %vm936_vm15 = vmor %vm934_vm7, %vm935_vm12 }
 0x1ef   :  { %v848_v56 = vand.u32 2147483647, %v2624_v29  ;;  %v922_v25 = vsel %vm921_vm13, %v1835_v15, %v918_v20  ;;  %v850_v57 = vand.u32 2147483648, %v2624_v29  ;;  %v893_v60 = vand.u32 2147483647, %v2635_v37 }
 0x1f0   :  { %v895_v61 = vand.u32 2147483648, %v2635_v37  ;;  %v927_v5 = vsel %vm2615_vm6, %v926_v55, %v922_v25  ;;  %v933_v46 = vadd.f32 %v1839_v31, %v932_v53  ;;  %v826_v0 = vsub.f32 1.0, %v825_v54 }
 0x1f1   :  { %v2677_v10 = vadd.f32 1.0, %v1841_v47  ;;  %v1845_v13 = vpop.eup %1844  ;;  %v949_v8 = vmul.f32 %v792_v51, %v2308_v4  ;;  %vm830_vm1 = vweird.f32 %v1843_v26  ;;  %vm844_vm2 = vweird.f32 %v2624_v29 }
 0x1f2   :  { %v2684_v15 = vperm.slane %v341_v23, 0  ;;  %v937_v35 = vsel %vm936_vm15, %v1839_v31, %v933_v46  ;;  %v827_v36 = vmul.f32 %v1843_v26, %v826_v0  ;;  %v840_v43 = vmul.f32 %v1845_v13, %v2624_v29  ;;  %vm831_vm9 = vmor %vm829_vm11, %vm830_vm1 }
 0x1f3   :  { %vm2687_vm5 = vcmp.eq.f32.partialorder %v848_v56, 8.507059e+37  ;;  %vm889_vm6 = vweird.f32 %v2635_v37  ;;  %v1847_v4 = vpop.eup %1846  ;;  %v958_v22 = vmul.f32 %v927_v5, %v2430_v14  ;;  %v942_v3 = vsel %vm2652_vm10, %v941_v48, %v937_v35 }
 0x1f4   :  { %v851_v28 = vor.u32 1.1754944e-38, %v850_v57  ;;  %1848 = vrcp.f32 %v2677_v10  ;;  %v828_v18 = vadd.f32 %v1843_v26, %v827_v36  ;;  %v841_v31 = vsub.f32 1.0, %v840_v43 }
 0x1f5   :  { %v885_v16 = vmul.f32 %v1847_v4, %v2635_v37  ;;  %vm2697_vm7 = vcmp.eq.f32.partialorder %v893_v60, 8.507059e+37  ;;  %v896_v6 = vor.u32 1.1754944e-38, %v895_v61  ;;  %v959_v32 = vmul.f32 %v942_v3, %v2469_v49 }
 0x1f6   :  { %vm845_vm8 = vweird.f32 %v1845_v13  ;;  %v908_v14 = vand.u32 2147483647, %v2677_v10  ;;  %v2708_v40 = vmul.f32 %v2684_v15, %v2500_v58  ;;  %v832_v44 = vsel %vm831_vm9, %v1843_v26, %v828_v18 }
 0x1f7   :  { %v842_v9 = vmul.f32 %v1845_v13, %v841_v31  ;;  %v886_v47 = vsub.f32 1.0, %v885_v16  ;;  %v342_v41 = vperm.slane %v2644_v59, 1  ;;  %v837_v48 = vsel %vm2667_vm14, %v836_v38, %v832_v44  ;;  %vm846_vm11 = vmor %vm844_vm2, %vm845_vm8 }
 0x1f8   :  { %vm890_vm10 = vweird.f32 %v1847_v4  ;;  %1012 = vrot.lane.b32.xlu2 %v2708_v40, %s1919_s25  ;;  %v2717_v49 = vmul.f32 %v2684_v15, %v2627_v19  ;;  %v347_v2 = vperm.slane %v2563_v39, 1  ;;  %v910_v26 = vand.u32 2147483648, %v2677_v10 }
 0x1f9   :  { %v843_v58 = vadd.f32 %v1845_v13, %v842_v9  ;;  %v887_v23 = vmul.f32 %v1847_v4, %v886_v47  ;;  %v2721_v51 = vperm.slane %v342_v41, 0  ;;  %v952_v20 = vmul.f32 %v837_v48, %v2512_v7  ;;  %vm891_vm12 = vmor %vm889_vm6, %vm890_vm10 }
 0x1fa   :  { %v1849_v59 = vpop.eup %1848  ;;  %1014 = vrot.lane.b32.xlu0 %v2717_v49, %s1919_s25  ;;  %v2729_v19 = vperm.slane %v347_v2, 0  ;;  %v2733_v39 = vmul.f32 %v2608_v1, %v2458_v33  ;;  %v974_v53 = vmul.f32 %v2608_v1, %v2576_v50  ;;  %v2739_v38 = vmul.f32 %v2608_v1, %v958_v22 }
 0x1fb   :  { %v847_v54 = vsel %vm846_vm11, %v1845_v13, %v843_v58  ;;  %v888_v24 = vadd.f32 %v1847_v4, %v887_v23  ;;  %v900_v7 = vmul.f32 %v1849_v59, %v2677_v10  ;;  %v2748_v33 = vmul.f32 %v2721_v51, %v2540_v34 }
 0x1fc   :  { %v852_v29 = vsel %vm2687_vm5, %v851_v28, %v847_v54  ;;  %v967_v50 = vmul.f32 %v2729_v19, %v2411_v12  ;;  %v971_v56 = vmul.f32 %v2729_v19, %v2482_v52  ;;  %v969_v61 = vmul.f32 %v2721_v51, %v949_v8 }
 0x1fd   :  { %v953_v25 = vmul.f32 %v852_v29, %v2515_v27  ;;  %v892_v57 = vsel %vm891_vm12, %v1847_v4, %v888_v24  ;;  %v901_v60 = vsub.f32 1.0, %v900_v7  ;;  %vm905_vm13 = vweird.f32 %v1849_v59  ;;  %1020 = vrot.lane.b32.xlu1 %v2748_v33, %s1919_s25 }
 0x1fe   :  { %v897_v37 = vsel %vm2697_vm7, %v896_v6, %v892_v57  ;;  %v1052_v34 = vpack.c.bf16 %v2748_v33, %v2708_v40  ;;  %v1140_v12 = vpack.c.bf16 %v967_v50, %v2639_v30  ;;  %v1053_v52 = vpack.c.bf16 %v969_v61, %v2717_v49 }
 0x1ff   :  { %v902_v5 = vmul.f32 %v1849_v59, %v901_v60  ;;  %v1141_v27 = vpack.c.bf16 %v971_v56, %v2733_v39  ;;  %v973_v46 = vmul.f32 %v2721_v51, %v953_v25  ;;  %v972_v0 = vmul.f32 %v2684_v15, %v952_v20 }
 0x200   :  { %1056 = vst [vmem:[#allocation3 + $0x40] sm:$0xff] %v1052_v34  ;;  %1108 = vrot.lane.b32.xlu2 %v967_v50, %s1919_s25  ;;  %v975_v13 = vmul.f32 %v2729_v19, %v2603_v42  ;;  %v979_v8 = vmul.f32 %v2729_v19, %v959_v32  ;;  %v956_v35 = vmul.f32 %v897_v37, %v2528_v21  ;;  %vm904_vm14 = vweird.f32 %v2677_v10 }
 0x201   :  { %v903_v36 = vadd.f32 %v1849_v59, %v902_v5  ;;  %1144 = vst [vmem:[#allocation3 + $0x48] sm:$0xff] %v1140_v12  ;;  %vm906_vm15 = vmor %vm904_vm14, %vm905_vm13  ;;  %v911_v43 = vor.u32 1.1754944e-38, %v910_v26  ;;  %v1054_v55 = vpack.c.bf16 %v973_v46, %v972_v0  ;;  %vm909_vm1 = vcmp.eq.f32.partialorder %v908_v14, 8.507059e+37 }
 0x202   :  { %1110 = vrot.lane.b32.xlu0 %v971_v56, %s1919_s25  ;;  %1057 = vst [vmem:[#allocation3 + $0x50] sm:$0xff] %v1053_v52  ;;  %v1142_v4 = vpack.c.bf16 %v975_v13, %v974_v53  ;;  %v1143_v22 = vpack.c.bf16 %v979_v8, %v2739_v38  ;;  %v976_v10 = vmul.f32 %v2684_v15, %v956_v35 }
 0x203   :  { %v907_v3 = vsel %vm906_vm15, %v1849_v59, %v903_v36  ;;  %1145 = vst [vmem:[#allocation3 + $0x58] sm:$0xff] %v1141_v27 }
 0x204   :  { %v912_v42 = vsel %vm909_vm1, %v911_v43, %v907_v3  ;;  %1058 = vst [vmem:[#allocation3 + $0x60] sm:$0xff] %v1054_v55 }
 0x205   :  { %v957_v21 = vmul.f32 %v912_v42, %v2569_v63  ;;  %1146 = vst [vmem:[#allocation3 + $0x68] sm:$0xff] %v1142_v4  ;;  %1068 = vrot.lane.b32.xlu1 %v2639_v30, %s1920_s3  ;;  %v1182_v63 = vld [vmem:[%s2980_s8] sm:$0xff]  ;;  %v1183_v30 = vld [vmem:[%s2980_s8 + $0x8] sm:$0xff] }
 0x206   :  { %1147 = vst [vmem:[#allocation3 + $0x78] sm:$0xff] %v1143_v22 }
 0x207   :  { %v977_v28 = vmul.f32 %v2721_v51, %v957_v21 }
 0x208   :  { %1022 = vrot.lane.b32.xlu2 %v969_v61, %s1919_s25 }
 0x209   :  { %v1055_v18 = vpack.c.bf16 %v977_v28, %v976_v10 }
 0x20a   :  { %1024 = vrot.lane.b32.xlu0 %v973_v46, %s1919_s25 }
 0x20b   :  { %1059 = vst [vmem:[#allocation3 + $0x70] sm:$0xff] %v1055_v18 }
 0x20d   :  { %1102 = vrot.lane.b32.xlu1 %v2733_v39, %s1919_s25 }
 0x210   :  { %1104 = vrot.lane.b32.xlu2 %v974_v53, %s1919_s25 }
 0x212   :  { %1072 = vrot.lane.b32.xlu0 %v974_v53, %s1920_s3 }
 0x215   :  { %1016 = vrot.lane.b32.xlu1 %v972_v0, %s1919_s25 }
 0x218   :  { %1080 = vrot.lane.b32.xlu2 %v975_v13, %s1920_s3 }
 0x21a   :  { %1106 = vrot.lane.b32.xlu0 %v2739_v38, %s1919_s25 }
 0x21d   :  { %1112 = vrot.lane.b32.xlu1 %v975_v13, %s1919_s25 }
 0x220   :  { %1018 = vrot.lane.b32.xlu2 %v976_v10, %s1919_s25 }
 0x222   :  { %1076 = vrot.lane.b32.xlu0 %v967_v50, %s1920_s3 }
 0x225   :  { %1026 = vrot.lane.b32.xlu1 %v977_v28, %s1919_s25 }
 0x228   :  { %1114 = vrot.lane.b32.xlu2 %v979_v8, %s1919_s25 }
 0x22a   :  { %986 = vrot.lane.b32.xlu0 %v976_v10, %s1920_s3 }
 0x22d   :  { %1078 = vrot.lane.b32.xlu1 %v971_v56, %s1920_s3 }
 0x230   :  { %1070 = vrot.lane.b32.xlu2 %v2733_v39, %s1920_s3 }
 0x232   :  { %1082 = vrot.lane.b32.xlu0 %v979_v8, %s1920_s3 }
 0x235   :  { %1074 = vrot.lane.b32.xlu1 %v2739_v38, %s1920_s3 }
 0x238   :  { %984 = vrot.lane.b32.xlu2 %v972_v0, %s1920_s3 }
 0x23a   :  { %980 = vrot.lane.b32.xlu0 %v2708_v40, %s1920_s3 }
 0x23d   :  { %992 = vrot.lane.b32.xlu1 %v973_v46, %s1920_s3 }
 0x240   :  { %994 = vrot.lane.b32.xlu2 %v977_v28, %s1920_s3 }
 0x242   :  { %990 = vrot.lane.b32.xlu0 %v969_v61, %s1920_s3 }
 0x245   :  { %982 = vrot.lane.b32.xlu1 %v2717_v49, %s1920_s3 }
 0x248   :  { %988 = vrot.lane.b32.xlu2 %v2748_v33, %s1920_s3 }
 0x24d   :  { %1186 = vperm.xlu1 %1782, %v1182_v63  }
 0x250   :  { %1191 = vperm.xlu2 %1783, %v1183_v30  }
 0x252   :  { %v1013_v31 = vpop.permute.xlu2 %1012 }
 0x25a   :  { %v1109_v16 = vpop.permute.xlu2 %1108 }
 0x25d   :  { %v1101_v62 = vpop.permute.xlu0 %1100 }
 0x25e   :  { %v1120_v6 = vsel %vm128_vm0, %v1109_v16, %v1101_v62  ;;  %v1116_v14 = vsel %vm128_vm0, %v1101_v62, %v1109_v16 }
 0x25f   :  { %v1125_v32 = vmul.f32 %v2108_v17, %v1120_v6 }
 0x261   :  { %v1148_v40 = vpack.c.bf16 %v1125_v32, %v1116_v14 }
 0x262   :  { %v1023_v44 = vpop.permute.xlu2 %1022 }
 0x263   :  { %1152 = vst [vmem:[#allocation3 + $0x88] sm:$0xff] %v1148_v40 }
 0x26a   :  { %v1105_v9 = vpop.permute.xlu2 %1104 }
 0x26c   :  { %v1015_v47 = vpop.permute.xlu0 %1014 }
 0x26d   :  { %v1033_v41 = vsel %vm128_vm0, %v1023_v44, %v1015_v47  ;;  %v1029_v49 = vsel %vm128_vm0, %v1015_v47, %v1023_v44 }
 0x26e   :  { %v1039_v48 = vmul.f32 %v2108_v17, %v1033_v41 }
 0x26f   :  { %v1021_v2 = vpop.permute.xlu1 %1020 }
 0x270   :  { %v1061_v58 = vpack.c.bf16 %v1039_v48, %v1029_v49  ;;  %v1032_v23 = vsel %vm128_vm0, %v1021_v2, %v1013_v31  ;;  %v1028_v20 = vsel %vm128_vm0, %v1013_v31, %v1021_v2 }
 0x271   :  { %v1037_v26 = vmul.f32 %v2108_v17, %v1032_v23 }
 0x272   :  { %1065 = vst [vmem:[#allocation3 + $0x90] sm:$0xff] %v1061_v58  ;;  %v1081_v59 = vpop.permute.xlu2 %1080 }
 0x273   :  { %v1060_v39 = vpack.c.bf16 %v1037_v26, %v1028_v20 }
 0x274   :  { %v1111_v53 = vpop.permute.xlu0 %1110 }
 0x275   :  { %1064 = vst [vmem:[#allocation3 + $0x80] sm:$0xff] %v1060_v39 }
 0x277   :  { %v1069_v54 = vpop.permute.xlu1 %1068 }
 0x27a   :  { %v1019_v24 = vpop.permute.xlu2 %1018 }
 0x27c   :  { %v1025_v7 = vpop.permute.xlu0 %1024 }
 0x27f   :  { %v1103_v38 = vpop.permute.xlu1 %1102 }
 0x280   :  { %v1121_v29 = vsel %vm128_vm0, %v1111_v53, %v1103_v38  ;;  %v1117_v56 = vsel %vm128_vm0, %v1103_v38, %v1111_v53  ;;  %v1692_v53 = vld [vmem:[#allocation3 + $0x88] sm:$0xf] }
 0x281   :  { %v1127_v33 = vmul.f32 %v2108_v17, %v1121_v29 }
 0x282   :  { %v1115_v50 = vpop.permute.xlu2 %1114 }
 0x283   :  { %v1149_v25 = vpack.c.bf16 %v1127_v33, %v1117_v56 }
 0x284   :  { %v1073_v57 = vpop.permute.xlu0 %1072 }
 0x285   :  { %v1090_v60 = vsel %vm111_vm3, %v1081_v59, %v1073_v57  ;;  %1153 = vst [vmem:[#allocation3 + $0x98] sm:$0xff] %v1149_v25  ;;  %v1086_v37 = vsel %vm111_vm3, %v1073_v57, %v1081_v59  ;;  %v1760_v25 = vld [vmem:[#allocation3 + $0x74] sm:$0xf0]  ;;  %v1678_v57 = vld [vmem:[#allocation3 + $0x78] sm:$0xf0] }
 0x286   :  { %v1096_v61 = vmul.f32 %v2141_v45, %v1090_v60 }
 0x287   :  { %v1017_v34 = vpop.permute.xlu1 %1016 }
 0x288   :  { %v1134_v12 = vpack.c.bf16 %v1086_v37, %v1096_v61  ;;  %v1034_v5 = vsel %vm128_vm0, %v1025_v7, %v1017_v34  ;;  %v1030_v46 = vsel %vm128_vm0, %v1017_v34, %v1025_v7 }
 0x289   :  { %v1041_v52 = vmul.f32 %v2108_v17, %v1034_v5  ;;  %v1676_v5 = vld [vmem:[#allocation3 + $0x68] sm:$0xf] }
 0x28a   :  { %1138 = vst [vmem:[#allocation3 + $0x28] sm:$0xff] %v1134_v12  ;;  %v1071_v27 = vpop.permute.xlu2 %1070 }
 0x28b   :  { %v1062_v0 = vpack.c.bf16 %v1041_v52, %v1030_v46  ;;  %v1758_v52 = vld [vmem:[#allocation3 + $0x6c] sm:$0xf]  ;;  %v1763_v46 = vld [vmem:[#allocation3 + $0x8c] sm:$0xf0] }
 0x28c   :  { %v1107_v13 = vpop.permute.xlu0 %1106  ;;  %v1764_v23 = vld [vmem:[#allocation3 + $0x94] sm:$0xf0]  ;;  %v1694_v26 = vld [vmem:[#allocation3 + $0x98] sm:$0xf0] }
 0x28d   :  { %v1123_v8 = vsel %vm128_vm0, %v1115_v50, %v1107_v13  ;;  %1066 = vst [vmem:[#allocation3 + $0xa0] sm:$0xff] %v1062_v0  ;;  %v1119_v36 = vsel %vm128_vm0, %v1107_v13, %v1115_v50  ;;  %v1693_v7 = vor.u32 %v1764_v23, %v1692_v53  ;;  %v1686_v0 = vld [vmem:[#allocation3 + $0x90] sm:$0xf0]  ;;  %v1677_v13 = vor.u32 %v1760_v25, %v1676_v5 }
 0x28e   :  { %v1131_v35 = vmul.f32 %v2108_v17, %v1123_v8  ;;  %v1681_v8 = vor.u32 %v1758_v52, %v1678_v57 }
 0x28f   :  { %v1113_v43 = vpop.permute.xlu1 %1112 }
 0x290   :  { %v1151_v55 = vpack.c.bf16 %v1131_v35, %v1119_v36  ;;  %v1122_v4 = vsel %vm128_vm0, %v1113_v43, %v1105_v9  ;;  %v1118_v42 = vsel %vm128_vm0, %v1105_v9, %v1113_v43  ;;  %v1756_v35 = vld [vmem:[#allocation3 + $0x54] sm:$0xf0]  ;;  %v1662_v36 = vld [vmem:[#allocation3 + $0x58] sm:$0xf0]  ;;  %v1684_v43 = vld [vmem:[#allocation3 + $0x80] sm:$0xf] }
 0x291   :  { %v1129_v22 = vmul.f32 %v2108_v17, %v1122_v4 }
 0x292   :  { %1155 = vst [vmem:[#allocation3 + $0xb8] sm:$0xff] %v1151_v55  ;;  %v2857_v3 = vpop.permute.xlu2 %984  ;;  %v1761_v55 = vld [vmem:[#allocation3 + $0x84] sm:$0xf] }
 0x293   :  { %v1150_v21 = vpack.c.bf16 %v1129_v22, %v1118_v42  ;;  %v1685_v22 = vor.u32 %v1763_v46, %v1684_v43  ;;  %v1689_v42 = vor.u32 %v1761_v55, %v1686_v0  ;;  %v1744_v0 = vld [vmem:[%s2979_s7] sm:$0xff] }
 0x294   :  { %v1077_v10 = vpop.permute.xlu0 %1076  ;;  %v1700_v50 = vld [vmem:[#allocation3 + $0xa0] sm:$0xf]  ;;  %v1765_v61 = vld [vmem:[#allocation3 + $0xa4] sm:$0xf] }
 0x295   :  { %v1088_v28 = vsel %vm111_vm3, %v1077_v10, %v1069_v54  ;;  %1154 = vst [vmem:[#allocation3 + $0xa8] sm:$0xff] %v1150_v21  ;;  %v1084_v63 = vsel %vm111_vm3, %v1069_v54, %v1077_v10  ;;  %v1762_v54 = vld [vmem:[#allocation3 + $0x8c] sm:$0xf]  ;;  %v1660_v10 = vld [vmem:[#allocation3 + $0x48] sm:$0xf] }
 0x296   :  { %v1092_v18 = vmul.f32 %v2141_v45, %v1088_v28  ;;  %v1697_v38 = vor.u32 %v1762_v54, %v1694_v26  ;;  %v1754_v28 = vld [vmem:[#allocation3 + $0x4c] sm:$0xf]  ;;  %v1652_v26 = vld [vmem:[#allocation3 + $0x40] sm:$0xf] }
 0x297   :  { %v1027_v30 = vpop.permute.xlu1 %1026 }
 0x298   :  { %v1132_v31 = vpack.c.bf16 %v1084_v63, %v1092_v18  ;;  %v1035_v16 = vsel %vm128_vm0, %v1027_v30, %v1019_v24  ;;  %v1031_v6 = vsel %vm128_vm0, %v1019_v24, %v1027_v30  ;;  %v1759_v63 = vld [vmem:[#allocation3 + $0x6c] sm:$0xf0]  ;;  %v1670_v30 = vld [vmem:[#allocation3 + $0x70] sm:$0xf0]  ;;  %vm1430_vm0 = vcmask 0  }
 0x299   :  { %v1043_v62 = vmul.f32 %v2108_v17, %v1035_v16  ;;  %v1768_v32 = vld [vmem:[#allocation3 + $0xb4] sm:$0xf0]  ;;  %v1710_v14 = vld [vmem:[#allocation3 + $0xb8] sm:$0xf0]  ;;  %v1665_v16 = vor.u32 %v1754_v28, %v1662_v36 }
 0x29a   :  { %1136 = vst [vmem:[#allocation3 + $0x8] sm:$0xff] %v1132_v31  ;;  %v995_v44 = vpop.permute.xlu2 %994  ;;  %v1661_v31 = vor.u32 %v1756_v35, %v1660_v10  ;;  %v1850_v10 = vld [vmem:[%s2974_s2 + $0x20] sm:$0xff] }
 0x29b   :  { %v1063_v40 = vpack.c.bf16 %v1043_v62, %v1031_v6  ;;  %v236_v28 = vmul.f32 0.9999, %v1850_v10 }
 0x29c   :  { %v987_v9 = vpop.permute.xlu0 %986  ;;  %v1708_v41 = vld [vmem:[#allocation3 + $0xa8] sm:$0xf]  ;;  %v1766_v48 = vld [vmem:[#allocation3 + $0xac] sm:$0xf] }
 0x29d   :  { %v1003_v47 = vsel %vm111_vm3, %v995_v44, %v987_v9  ;;  %1067 = vst [vmem:[#allocation3 + $0xb0] sm:$0xff] %v1063_v40  ;;  %v1709_v2 = vor.u32 %v1768_v32, %v1708_v41  ;;  %v1713_v58 = vor.u32 %v1766_v48, %v1710_v14  ;;  %v999_v17 = vsel %vm111_vm3, %v987_v9, %v995_v44  ;;  %v1668_v14 = vld [vmem:[#allocation3 + $0x60] sm:$0xf]  ;;  %v1757_v40 = vld [vmem:[#allocation3 + $0x64] sm:$0xf] }
 0x29e   :  { %v1010_v49 = vmul.f32 %v2141_v45, %v1003_v47  ;;  %v1669_v9 = vor.u32 %v1759_v63, %v1668_v14  ;;  %v1673_v47 = vor.u32 %v1757_v40, %v1670_v30  ;;  %v1755_v48 = vld [vmem:[#allocation3 + $0x4c] sm:$0xf0]  ;;  %v1853_v40 = vld [vmem:[%s2973_s1 + $0x28] sm:$0xff] }
 0x29f   :  { %v1079_v59 = vpop.permute.xlu1 %1078  ;;  %1352 = vmatpush.bf16.msrb.mxu2 %v1709_v2  ;;  %1366 = vmatpush.bf16.msrb.mxu3 %v1713_v58 }
 0x2a0   :  { %v1047_v20 = vpack.c.bf16 %v999_v17, %v1010_v49  ;;  %v1089_v39 = vsel %vm111_vm3, %v1079_v59, %v1071_v27  ;;  %v1085_v29 = vsel %vm111_vm3, %v1071_v27, %v1079_v59  ;;  %v1654_v49 = vld [vmem:[#allocation3 + $0x50] sm:$0xf0]  ;;  %v1753_v59 = vld [vmem:[#allocation3 + $0x44] sm:$0xf] }
 0x2a1   :  { %v1094_v24 = vmul.f32 %v2141_v45, %v1089_v39  ;;  %v1653_v39 = vor.u32 %v1755_v48, %v1652_v26  ;;  %v1657_v53 = vor.u32 %v1753_v59, %v1654_v49  ;;  %v1628_v57 = vld [vmem:[#allocation3 + $0x8] sm:$0xf] }
 0x2a2   :  { %1051 = vst [vmem:[#allocation3 + $0x30] sm:$0xff] %v1047_v20  ;;  %v989_v62 = vpop.permute.xlu2 %988 }
 0x2a3   :  { %v1133_v33 = vpack.c.bf16 %v1085_v29, %v1094_v24  ;;  %1353 = vmatpush.bf16.msrb.mxu2 %v1693_v7  ;;  %1367 = vmatpush.bf16.msrb.mxu3 %v1697_v38  ;;  %v1644_v7 = vld [vmem:[#allocation3 + $0x28] sm:$0xf]  ;;  %v1750_v29 = vld [vmem:[#allocation3 + $0x2c] sm:$0xf] }
 0x2a4   :  { %v1083_v56 = vpop.permute.xlu0 %1082  ;;  %v1767_v60 = vld [vmem:[#allocation3 + $0xac] sm:$0xf0]  ;;  %v1702_v37 = vld [vmem:[#allocation3 + $0xb0] sm:$0xf0] }
 0x2a5   :  { %1137 = vst [vmem:[#allocation3 + $0x18] sm:$0xff] %v1133_v33  ;;  %v1701_v34 = vor.u32 %v1767_v60, %v1700_v50  ;;  %v1705_v12 = vor.u32 %v1765_v61, %v1702_v37  ;;  %v1746_v61 = vld [vmem:[#allocation3 + $0xc] sm:$0xf] }
 0x2a7   :  { %1324 = vmatpush.bf16.msrb.mxu0 %v1701_v34  ;;  %1338 = vmatpush.bf16.msrb.mxu1 %v1705_v12  ;;  %v1075_v27 = vpop.permute.xlu1 %1074 }
 0x2a8   :  { %v1091_v4 = vsel %vm111_vm3, %v1083_v56, %v1075_v27  ;;  %1354 = vmatpush.bf16.msrb.mxu2 %v1677_v13  ;;  %1368 = vmatpush.bf16.msrb.mxu3 %v1681_v8  ;;  %v1087_v18 = vsel %vm111_vm3, %v1075_v27, %v1083_v56 }
 0x2a9   :  { %v1098_v21 = vmul.f32 %v2141_v45, %v1091_v4  ;;  %v1751_v8 = vld [vmem:[#allocation3 + $0x2c] sm:$0xf0]  ;;  %v1638_v36 = vld [vmem:[#allocation3 + $0x30] sm:$0xf0] }
 0x2ab   :  { %1325 = vmatpush.bf16.msrb.mxu0 %v1685_v22  ;;  %1339 = vmatpush.bf16.msrb.mxu1 %v1689_v42  ;;  %v1135_v6 = vpack.c.bf16 %v1087_v18, %v1098_v21  ;;  %v1851_v18 = vld [vmem:[%s2974_s2 + $0x28] sm:$0xff] }
 0x2ac   :  { %v981_v32 = vpop.permute.xlu0 %980  ;;  %1355 = vmatpush.bf16.msrb.mxu2 %v1661_v31  ;;  %1369 = vmatpush.bf16.msrb.mxu3 %v1665_v16  ;;  %v1748_v60 = vld [vmem:[#allocation3 + $0x14] sm:$0xf0]  ;;  %v1630_v37 = vld [vmem:[#allocation3 + $0x18] sm:$0xf0]  ;;  %v237_v63 = vmul.f32 0.9999, %v1851_v18 }
 0x2ad   :  { %v1000_v44 = vsel %vm111_vm3, %v989_v62, %v981_v32  ;;  %1139 = vst [vmem:[#allocation3 + $0x38] sm:$0xff] %v1135_v6  ;;  %v996_v2 = vsel %vm111_vm3, %v981_v32, %v989_v62  ;;  %v1629_v5 = vor.u32 %v1748_v60, %v1628_v57  ;;  %v1633_v52 = vor.u32 %v1746_v61, %v1630_v37  ;;  %v1852_v32 = vld [vmem:[%s2973_s1 + $0x20] sm:$0xff]  ;;  %v1861_v61 = vld [vmem:[%s2973_s1 + $0x38] sm:$0xff] }
 0x2ae   :  { %v1004_v41 = vmul.f32 %v2141_v45, %v1000_v44  ;;  %v240_v14 = vsub.f32 %v1852_v32, %v236_v28  ;;  %v241_v44 = vsub.f32 %v1853_v40, %v237_v63  ;;  %v1865_v18 = vld [vmem:[%s2973_s1 + $0x18] sm:$0xff] }
 0x2af   :  { %1326 = vmatpush.bf16.msrb.mxu0 %v1669_v9  ;;  %1340 = vmatpush.bf16.msrb.mxu1 %v1673_v47  ;;  %v993_v58 = vpop.permute.xlu1 %992  ;;  %v1854_v9 = vld [vmem:[%s2974_s2] sm:$0xff] }
 0x2b0   :  { %v1044_v17 = vpack.c.bf16 %v996_v2, %v1004_v41  ;;  %v1002_v23 = vsel %vm111_vm3, %v993_v58, %v2857_v3  ;;  %v998_v54 = vsel %vm111_vm3, %v2857_v3, %v993_v58  ;;  %v91_v47 = vmul.f32 0.9999, %v1854_v9  ;;  %v1855_v41 = vld [vmem:[%s2974_s2 + $0x8] sm:$0xff]  ;;  %v1856_v58 = vld [vmem:[%s2974_s2 + $0x30] sm:$0xff] }
 0x2b1   :  { %v1008_v20 = vmul.f32 %v2141_v45, %v1002_v23  ;;  %v92_v48 = vmul.f32 0.9999, %v1855_v41  ;;  %v1857_v23 = vld [vmem:[%s2974_s2 + $0x38] sm:$0xff] }
 0x2b2   :  { %1048 = vst [vmem:[#allocation3] sm:$0xff] %v1044_v17  ;;  %v238_v17 = vmul.f32 0.9999, %v1856_v58  ;;  %v239_v26 = vmul.f32 0.9999, %v1857_v23 }
 0x2b3   :  { %v1046_v24 = vpack.c.bf16 %v998_v54, %v1008_v20  ;;  %1327 = vmatpush.bf16.msrb.mxu0 %v1653_v39  ;;  %1341 = vmatpush.bf16.msrb.mxu1 %v1657_v53  ;;  %v1192_v54 = vpop.permute.xlu2 %1191 }
 0x2b4   :  { %v1752_v38 = vld [vmem:[#allocation3 + $0x34] sm:$0xf0]  ;;  %v1646_v33 = vld [vmem:[#allocation3 + $0x38] sm:$0xf0]  ;;  %v991_v50 = vpop.permute.xlu0 %990  ;;  %v243_v37 = vsub.f32 %v1861_v61, %v239_v26 }
 0x2b5   :  { %1050 = vst [vmem:[#allocation3 + $0x20] sm:$0xff] %v1046_v24  ;;  %v1645_v56 = vor.u32 %v1752_v38, %v1644_v7  ;;  %v1649_v25 = vor.u32 %v1750_v29, %v1646_v33  ;;  %v1858_v24 = vld [vmem:[%s2973_s1] sm:$0xff]  ;;  %v1859_v29 = vld [vmem:[%s2973_s1 + $0x8] sm:$0xff] }
 0x2b6   :  { %v95_v7 = vsub.f32 %v1858_v24, %v91_v47  ;;  %v96_v33 = vsub.f32 %v1859_v29, %v92_v48 }
 0x2b7   :  { %v983_v34 = vpop.permute.xlu1 %982  ;;  %1356 = vmatpush.bf16.msrb.mxu2 %v1645_v56  ;;  %1370 = vmatpush.bf16.msrb.mxu3 %v1649_v25  ;;  %v1860_v56 = vld [vmem:[%s2973_s1 + $0x30] sm:$0xff] }
 0x2b8   :  { %v1001_v3 = vsel %vm111_vm3, %v991_v50, %v983_v34  ;;  %v997_v46 = vsel %vm111_vm3, %v983_v34, %v991_v50  ;;  %v242_v25 = vsub.f32 %v1860_v56, %v238_v17 }
 0x2b9   :  { %v1006_v12 = vmul.f32 %v2141_v45, %v1001_v3  ;;  %v1620_v11 = vld [vmem:[#allocation3] sm:$0xf]  ;;  %v1745_v4 = vld [vmem:[#allocation3 + $0x4] sm:$0xf] }
 0x2bb   :  { %v1045_v13 = vpack.c.bf16 %v997_v46, %v1006_v12  ;;  %1357 = vmatpush.bf16.msrb.mxu2 %v1629_v5  ;;  %1371 = vmatpush.bf16.msrb.mxu3 %v1633_v52  ;;  %v1862_v52 = vld [vmem:[%s2974_s2 + $0x10] sm:$0xff] }
 0x2bc   :  { %v1636_v27 = vld [vmem:[#allocation3 + $0x20] sm:$0xf]  ;;  %v1749_v35 = vld [vmem:[#allocation3 + $0x24] sm:$0xf]  ;;  %v93_v46 = vmul.f32 0.9999, %v1862_v52 }
 0x2bd   :  { %1049 = vst [vmem:[#allocation3 + $0x10] sm:$0xff] %v1045_v13  ;;  %v1637_v43 = vor.u32 %v1751_v8, %v1636_v27  ;;  %v1641_v55 = vor.u32 %v1749_v35, %v1638_v36 }
 0x2be   :  { %1716 = vmatmul.msk.bf16.vlgmr.msrb.gmra.mxu2 %vm557_vm4, %v1744_v0  ;;  %1717 = vmatmul.msk.bf16.vlgmr.msrb.gmra.mxu3 %vm557_vm4, %v1744_v0 }
 0x2bf   :  { %1328 = vmatpush.bf16.msrb.mxu0 %v1637_v43  ;;  %1342 = vmatpush.bf16.msrb.mxu1 %v1641_v55  ;;  %v1187_v30 = vpop.permute.xlu1 %1186 }
 0x2c4   :  { %v1747_v45 = vld [vmem:[#allocation3 + $0xc] sm:$0xf0]  ;;  %v1622_v22 = vld [vmem:[#allocation3 + $0x10] sm:$0xf0] }
 0x2c5   :  { %v1621_v42 = vor.u32 %v1747_v45, %v1620_v11  ;;  %v1625_v21 = vor.u32 %v1745_v4, %v1622_v22 }
 0x2c7   :  { %1329 = vmatpush.bf16.msrb.mxu0 %v1621_v42  ;;  %1343 = vmatpush.bf16.msrb.mxu1 %v1625_v21  ;;  %v1864_v42 = vld [vmem:[%s2973_s1 + $0x10] sm:$0xff] }
 0x2c8   :  { %v97_v21 = vsub.f32 %v1864_v42, %v93_v46 }
 0x2ca   :  { %1714 = vmatmul.msk.bf16.vlgmr.msrb.gmra.mxu0 %vm557_vm4, %v1744_v0  ;;  %1715 = vmatmul.msk.bf16.vlgmr.msrb.gmra.mxu1 %vm557_vm4, %v1744_v0  ;;  %v1863_v0 = vld [vmem:[%s2974_s2 + $0x18] sm:$0xff] }
 0x2cb   :  { %v94_v13 = vmul.f32 0.9999, %v1863_v0 }
 0x2cd   :  { %v98_v63 = vsub.f32 %v1865_v18, %v94_v13 }
 0x341   :  { %v1359_v31 = vpop.f32.mrf.mxu2  ;;  %v1373_v16 = vpop.f32.mrf.mxu3 }
 0x342   :  { %v1360_v62 = vadd.f32 %v1359_v31, %v1187_v30  ;;  %v1374_v6 = vadd.f32 %v1373_v16, %v1187_v30 }
 0x344   :  { %v1380_v49 = vmul.f32 %v1360_v62, %v2608_v1  ;;  %v1381_v2 = vmul.f32 %v1374_v6, %v2729_v19 }
 0x346   :  { %v1408_v59 = vsub.f32 %v1380_v49, %v240_v14  ;;  %v1409_v20 = vsub.f32 %v1381_v2, %v241_v44 }
 0x347   :  { %v1331_v39 = vpop.f32.mrf.mxu0  ;;  %v1345_v53 = vpop.f32.mrf.mxu1 }
 0x348   :  { %v1332_v38 = vadd.f32 %v1331_v39, %v1187_v30  ;;  %v1346_v50 = vadd.f32 %v1345_v53, %v1187_v30  ;;  %v1412_v8 = vmul.f32 %v1408_v59, %v1408_v59  ;;  %v1413_v27 = vmul.f32 %v1409_v20, %v1409_v20 }
 0x349   :  { %v1361_v57 = vpop.f32.mrf.mxu2  ;;  %v1375_v60 = vpop.f32.mrf.mxu3 }
 0x34a   :  { %v1378_v34 = vmul.f32 %v1332_v38, %v2684_v15  ;;  %v1379_v3 = vmul.f32 %v1346_v50, %v2721_v51  ;;  %v1362_v12 = vadd.f32 %v1361_v57, %v1192_v54  ;;  %v1376_v5 = vadd.f32 %v1375_v60, %v1192_v54 }
 0x34c   :  { %v1386_v35 = vsub.f32 %v1378_v34, %v95_v7  ;;  %v1387_v36 = vsub.f32 %v1379_v3, %v96_v33  ;;  %v1384_v43 = vmul.f32 %v1362_v12, %v2608_v1  ;;  %v1385_v55 = vmul.f32 %v1376_v5, %v2729_v19 }
 0x34d   :  { %v1416_v19 = vadd.f32 %v1413_v27, %v1412_v8 }
 0x34e   :  { %v1390_v11 = vmul.f32 %v1386_v35, %v1386_v35  ;;  %v1391_v45 = vmul.f32 %v1387_v36, %v1387_v36  ;;  %v1410_v4 = vsub.f32 %v1384_v43, %v242_v25  ;;  %v1411_v22 = vsub.f32 %v1385_v55, %v243_v37 }
 0x34f   :  { %v1333_v10 = vpop.f32.mrf.mxu0  ;;  %v1347_v28 = vpop.f32.mrf.mxu1 }
 0x350   :  { %v1414_v30 = vmul.f32 %v1410_v4, %v1410_v4  ;;  %v1334_v1 = vadd.f32 %v1333_v10, %v1192_v54  ;;  %v1348_v31 = vadd.f32 %v1347_v28, %v1192_v54  ;;  %v1394_v16 = vadd.f32 %v1391_v45, %v1390_v11 }
 0x351   :  { %v1415_v32 = vmul.f32 %v1411_v22, %v1411_v22 }
 0x352   :  { %v1382_v62 = vmul.f32 %v1334_v1, %v2684_v15  ;;  %v1383_v6 = vmul.f32 %v1348_v31, %v2721_v51  ;;  %v1417_v14 = vadd.f32 %v1416_v19, %v1414_v30 }
 0x354   :  { %v1388_v40 = vsub.f32 %v1382_v62, %v97_v21  ;;  %v1418_v44 = vadd.f32 %v1417_v14, %v1415_v32  ;;  %v1389_v9 = vsub.f32 %v1383_v6, %v98_v63 }
 0x356   :  { %v1392_v47 = vmul.f32 %v1388_v40, %v1388_v40  ;;  %1419 = vadd.xlane.f32.xlu1 %v1418_v44  ;;  %v1393_v41 = vmul.f32 %v1389_v9, %v1389_v9 }
 0x358   :  { %v1395_v48 = vadd.f32 %v1394_v16, %v1392_v47 }
 0x35a   :  { %v1396_v49 = vadd.f32 %v1395_v48, %v1393_v41 }
 0x35c   :  { %1397 = vadd.xlane.f32.xlu0 %v1396_v49 }
 0x3c9   :  { %v1420_v15 = vpop.xlane.xlu1 %1419 }
 0x3ca   :  { %v1421_v51 = vrot.slane %v1420_v15, 4 }
 0x3cc   :  { %v1422_v2 = vadd.f32 %v1421_v51, %v1420_v15 }
 0x3ce   :  { %v1423_v58 = vrot.slane %v1422_v2, 2 }
 0x3cf   :  { %v1398_v17 = vpop.xlane.xlu0 %1397 }
 0x3d0   :  { %v1399_v23 = vrot.slane %v1398_v17, 4  ;;  %v1424_v59 = vadd.f32 %v1423_v58, %v1422_v2 }
 0x3d2   :  { %v1400_v26 = vadd.f32 %v1399_v23, %v1398_v17  ;;  %v1425_v53 = vrot.slane %v1424_v59, 1 }
 0x3d4   :  { %v1401_v20 = vrot.slane %v1400_v26, 2  ;;  %v1426_v7 = vadd.f32 %v1425_v53, %v1424_v59 }
 0x3d6   :  { %v1402_v39 = vadd.f32 %v1401_v20, %v1400_v26 }
 0x3d8   :  { %v1403_v54 = vrot.slane %v1402_v39, 1 }
 0x3da   :  { %v1404_v24 = vadd.f32 %v1403_v54, %v1402_v39 }
 0x3dc   :  { %1769 = vpush %v1404_v24 }
 0x3dd   :  { %1771 = vpush %v1426_v7 }
 0x40d   :  { %s1770_s23 = spop %1769 }
 0x40e   :  { %v1406_v38 = vstv %s1770_s23  ;;  %s1772_s28 = spop %1771 }
 0x40f   :  { %v1428_v29 = vstv %s1772_s28 }
 0x410   :  { %v1429_v33 = vadd.f32 %v1428_v29, %v1406_v38 }
 0x412   :  { %1431 = vst.msk [vmem:[#allocation6] sm:$0x1] %vm1430_vm0, %v1429_v33 }
 0x413   :  { %1455 = dma.vmem_to_hbm [thread:$0]  %s1451_s22, 16, %s1453_s27, [#allocation7]  }
 0x414   :  { %1914 = dma.done.wait [#allocation5], 1024  }
 0x415   :  { %1915 = vsyncadd [#allocation5], 4294966272 }
 0x416   :  { %1916 = dma.done.wait [#allocation7], 16  }
 0x417   :  { %1917 = vsyncadd [#allocation7], 4294967280 }
 0x418   :  { %1464 = vsyncpa [#allocation5], 1 }
 0x419   :  { %1465 = vsyncpa [#allocation7], 1 }

</bundles_post_ra>
